<compile_context>
chip_gen: v7x
topology: tpu7x:2x2x1
jax: 0.10.0
libtpu: 0.0.40
codegen_flags: <defaults>
</compile_context>

<pallas_src>
import jax
import jax.numpy as jnp
from jax.experimental import pallas as pl
from jax.experimental.pallas import tpu as pltpu


def _round_up(n, m):
    return ((n + m - 1) // m) * m


def _is_v5_device():
    try:
        kind = getattr(jax.devices()[0], "device_kind", "") or ""
    except Exception:
        kind = ""
    return "v5" in kind.lower()


# ----------------------------------------------------------------------------
# Kernel bodies (one batch tile [tile_b, x_dim_pad] fully resident in VMEM)
# ----------------------------------------------------------------------------

def _disc_kernel_bf16_epi(x_ref,
                          w1_ref, b1_ref,
                          w2_ref, b2_ref,
                          w3_ref, b3_ref,
                          w4p_ref, b4_ref,
                          o_ref):
    """v6e/v7x path: bf16 epilogues (bf16 VPU), layer 4 on the MXU."""
    x = x_ref[...]                                                     # bf16 [tb, xp]

    h = jnp.dot(x, w1_ref[...], preferred_element_type=jnp.float32)   # f32 [tb,512]
    h = jnp.maximum(h.astype(jnp.bfloat16) + b1_ref[...], 0)          # bf16

    h = jnp.dot(h, w2_ref[...], preferred_element_type=jnp.float32)   # f32 [tb,256]
    h = jnp.maximum(h.astype(jnp.bfloat16) + b2_ref[...], 0)          # bf16

    h = jnp.dot(h, w3_ref[...], preferred_element_type=jnp.float32)   # f32 [tb,128]
    h = jnp.maximum(h.astype(jnp.bfloat16) + b3_ref[...], 0)          # bf16

    # Layer 4 on the MXU (it has slack on v6e/v7x; VALU is the binding slot).
    # w4p is [128,128] bf16 with the real weight vector in column 0.
    out = jnp.dot(h, w4p_ref[...], preferred_element_type=jnp.float32)  # f32 [tb,128]
    o_ref[...] = out[:, :1] + b4_ref[...]


def _disc_kernel_f32_epi(x_ref,
                         w1_ref, b1_ref,
                         w2_ref, b2_ref,
                         w3_ref, b3_ref,
                         w4t_ref, b4_ref,
                         o_ref):
    """v5e/v5p path: f32 epilogues (no bf16 VPU), layer 4 on the VPU/XLU."""
    x = x_ref[...]                                                     # bf16 [tb, xp]

    h = jnp.dot(x, w1_ref[...], preferred_element_type=jnp.float32)   # f32 [tb,512]
    h = jnp.maximum(h + b1_ref[...], 0.0).astype(jnp.bfloat16)

    h = jnp.dot(h, w2_ref[...], preferred_element_type=jnp.float32)   # f32 [tb,256]
    h = jnp.maximum(h + b2_ref[...], 0.0).astype(jnp.bfloat16)

    h = jnp.dot(h, w3_ref[...], preferred_element_type=jnp.float32)   # f32 [tb,128]
    h3 = jnp.maximum(h + b3_ref[...], 0.0)                            # f32 [tb,128]

    # Layer 4: elementwise multiply by w4^T ([1,128]) + lane reduction; the
    # MXU is the bottleneck on v5e so this stays off it ("free filler").
    o_ref[...] = (jnp.sum(h3 * w4t_ref[...], axis=-1, keepdims=True)
                  + b4_ref[...])


# ----------------------------------------------------------------------------
# Tiling / wrapper
# ----------------------------------------------------------------------------

def _pick_tile(B, x_dim_pad, tile_b):
    """Pick a batch tile (multiple of 128) that fits scoped VMEM and gives
    the parallel grid axis >= 2 steps when the batch is big enough."""
    tile_b = max(128, _round_up(min(tile_b, _round_up(B, 128)), 128))

    # bf16 weights (2 pipeline buffers even for constant-index blocks).
    weight_bytes = 2 * 2 * (x_dim_pad * 512 + 512 * 256 + 256 * 128 + 128 * 128)

    def step_bytes(tb):
        x_tile = 2 * tb * x_dim_pad * 2                  # bf16 x tile, double-buffered
        acts = tb * (512 + 256 + 128) * (4 + 2)          # f32 accumulators + bf16 copies
        out = 2 * tb * 4
        return weight_bytes + x_tile + acts + out

    budget = 12 << 20            # stay inside v5e's 16 MiB scoped-VMEM default
    while tile_b > 256 and step_bytes(tile_b) > budget:
        tile_b -= 128

    B_pad = _round_up(B, tile_b)
    # v7x has 2 TensorCores: make sure "parallel" has at least 2 grid steps.
    if B_pad // tile_b == 1 and B_pad >= 256:
        tile_b = _round_up(B_pad // 2, 128)
        B_pad = _round_up(B, tile_b)

    return tile_b, B_pad, step_bytes(tile_b)


def discriminator_forward(x, params, *, tile_b=1024):
    """x: [B, x_dim] float32 -> logits [B, 1] float32 (eval-mode dropout)."""
    (w1, b1), (w2, b2), (w3, b3), (w4, b4) = params
    B, x_dim = x.shape

    x_dim_pad = _round_up(x_dim, 128)
    tile_b, B_pad, vmem_est = _pick_tile(B, x_dim_pad, tile_b)
    n_tiles = B_pad // tile_b

    # Single bf16 padding pass for x and w1 (no f32 staging buffers).
    x_b = jnp.pad(x.astype(jnp.bfloat16),
                  ((0, B_pad - B), (0, x_dim_pad - x_dim)))
    w1_b = jnp.pad(w1.astype(jnp.bfloat16), ((0, x_dim_pad - x_dim), (0, 0)))
    w2_b = w2.astype(jnp.bfloat16)
    w3_b = w3.astype(jnp.bfloat16)
    b4_2d = b4.reshape(1, 1).astype(jnp.float32)

    if _is_v5_device():
        kernel = _disc_kernel_f32_epi
        b1_a = b1.reshape(1, -1).astype(jnp.float32)
        b2_a = b2.reshape(1, -1).astype(jnp.float32)
        b3_a = b3.reshape(1, -1).astype(jnp.float32)
        w4_a = w4.reshape(1, -1).astype(jnp.float32)         # [1,128] for VPU layer 4
    else:
        kernel = _disc_kernel_bf16_epi
        b1_a = b1.reshape(1, -1).astype(jnp.bfloat16)
        b2_a = b2.reshape(1, -1).astype(jnp.bfloat16)
        b3_a = b3.reshape(1, -1).astype(jnp.bfloat16)
        w4_a = jnp.pad(w4.reshape(-1, 1).astype(jnp.bfloat16),
                       ((0, 0), (0, 127)))                   # [128,128] for MXU layer 4

    def rep(arr):  # constant (replicated) block: DMA'd once across the grid
        return pl.BlockSpec(arr.shape, lambda i: (0, 0))

    grid_spec = pltpu.PrefetchScalarGridSpec(
        num_scalar_prefetch=0,
        grid=(n_tiles,),
        in_specs=[
            pl.BlockSpec((tile_b, x_dim_pad), lambda i: (i, 0)),  # x tile
            rep(w1_b), rep(b1_a),
            rep(w2_b), rep(b2_a),
            rep(w3_b), rep(b3_a),
            rep(w4_a), rep(b4_2d),
        ],
        # Output is a (tile_b, 1) column; output bytes are tiny, so the
        # lane-sparse store is a secondary cost here.
        out_specs=pl.BlockSpec((tile_b, 1), lambda i: (i, 0)),
    )

    vmem_limit = None
    if vmem_est > (16 << 20):
        # Large x_dim: raise the scoped-VMEM limit (capped well under v7x's
        # 64 MiB physical VMEM).
        vmem_limit = int(min(vmem_est + (8 << 20), 48 << 20))

    out = pl.pallas_call(
        kernel,
        out_shape=jax.ShapeDtypeStruct((B_pad, 1), jnp.float32),
        grid_spec=grid_spec,
        compiler_params=pltpu.CompilerParams(
            dimension_semantics=("parallel",),    # shards batch tiles across TCs (v7x)
            vmem_limit_bytes=vmem_limit),
    )(x_b, w1_b, b1_a, w2_b, b2_a, w3_b, b3_a, w4_a, b4_2d)

    return out[:B]


# ----------------------------------------------------------------------------
# Init + reference + harness
# ----------------------------------------------------------------------------

def init_params(key, x_dim):
    """nn.Linear-style init (U(-1/sqrt(fan_in), +)).

    Weights stored as [in, out] (transpose of PyTorch's [out, in]);
    biases as [1, out].
    """
    dims = [x_dim, 512, 256, 128, 1]
    params = []
    for i in range(4):
        fan_in, fan_out = dims[i], dims[i + 1]
        key, kw, kb = jax.random.split(key, 3)
        bound = 1.0 / (fan_in ** 0.5)
        w = jax.random.uniform(kw, (fan_in, fan_out), jnp.float32, -bound, bound)
        b = jax.random.uniform(kb, (1, fan_out), jnp.float32, -bound, bound)
        params.append((w, b))
    return params


def _reference_forward(x, params):
    """Pure-JAX reference emulating the kernel's bf16-matmul / f32-accum math."""
    (w1, b1), (w2, b2), (w3, b3), (w4, b4) = params
    h = x.astype(jnp.bfloat16)
    h = jnp.maximum(jnp.dot(h, w1.astype(jnp.bfloat16),
                            preferred_element_type=jnp.float32) + b1, 0.0)
    h = jnp.maximum(jnp.dot(h.astype(jnp.bfloat16), w2.astype(jnp.bfloat16),
                            preferred_element_type=jnp.float32) + b2, 0.0)
    h = jnp.maximum(jnp.dot(h.astype(jnp.bfloat16), w3.astype(jnp.bfloat16),
                            preferred_element_type=jnp.float32) + b3, 0.0)
    return jnp.dot(h.astype(jnp.bfloat16), w4.astype(jnp.bfloat16),
                   preferred_element_type=jnp.float32) + b4.reshape(1, 1)


if __name__ == "__main__":
    key = jax.random.PRNGKey(0)
    x_dim = 64
    batch = 8

    kp, kx = jax.random.split(key)
    params = init_params(kp, x_dim)
    x = jax.random.normal(kx, (batch, x_dim), jnp.float32)

    out = discriminator_forward(x, params)
    out = jax.block_until_ready(out)

    ref = _reference_forward(x, params)
    assert out.shape == (batch, 1), out.shape
    max_err = jnp.max(jnp.abs(out - ref))
    assert jnp.allclose(out, ref, atol=2e-2, rtol=2e-2), f"max abs err {max_err}"

    print("KERNEL_OK")
</pallas_src>

<mosaic_0001>
module attributes {stable_mosaic.version = 11 : i64} {
  func.func @_disc_kernel_bf16_epi(%arg0: i32, %arg1: memref<128x128xbf16, #tpu.memory_space<vmem>>, %arg2: memref<128x512xbf16, #tpu.memory_space<vmem>>, %arg3: memref<1x512xbf16, #tpu.memory_space<vmem>>, %arg4: memref<512x256xbf16, #tpu.memory_space<vmem>>, %arg5: memref<1x256xbf16, #tpu.memory_space<vmem>>, %arg6: memref<256x128xbf16, #tpu.memory_space<vmem>>, %arg7: memref<1x128xbf16, #tpu.memory_space<vmem>>, %arg8: memref<128x128xbf16, #tpu.memory_space<vmem>>, %arg9: memref<1x1xf32, #tpu.memory_space<vmem>>, %arg10: memref<128x1xf32, #tpu.memory_space<vmem>>) attributes {dimension_semantics = [#tpu.dimension_semantics<parallel>], iteration_bounds = array<i64: 1>, scalar_prefetch = 0 : i64, scratch_operands = 0 : i64, tpu.core_type = #tpu.core_type<tc>, window_params = [{transform_indices = @transform_0, window_bounds = array<i64: 128, 128>}, {pipeline_mode = #tpu.pipeline_mode<synchronous>, transform_indices = @transform_1, window_bounds = array<i64: 128, 512>}, {pipeline_mode = #tpu.pipeline_mode<synchronous>, transform_indices = @transform_2, window_bounds = array<i64: 1, 512>}, {pipeline_mode = #tpu.pipeline_mode<synchronous>, transform_indices = @transform_3, window_bounds = array<i64: 512, 256>}, {pipeline_mode = #tpu.pipeline_mode<synchronous>, transform_indices = @transform_4, window_bounds = array<i64: 1, 256>}, {pipeline_mode = #tpu.pipeline_mode<synchronous>, transform_indices = @transform_5, window_bounds = array<i64: 256, 128>}, {pipeline_mode = #tpu.pipeline_mode<synchronous>, transform_indices = @transform_6, window_bounds = array<i64: 1, 128>}, {pipeline_mode = #tpu.pipeline_mode<synchronous>, transform_indices = @transform_7, window_bounds = array<i64: 128, 128>}, {pipeline_mode = #tpu.pipeline_mode<synchronous>, transform_indices = @transform_8, window_bounds = array<i64: 1, 1>}, {transform_indices = @transform_9, window_bounds = array<i64: 128, 1>}]} {
    %c0 = arith.constant 0 : index
    %c0_0 = arith.constant 0 : index
    %0 = vector.load %arg1[%c0, %c0_0] : memref<128x128xbf16, #tpu.memory_space<vmem>>, vector<128x128xbf16>
    %c0_1 = arith.constant 0 : index
    %c0_2 = arith.constant 0 : index
    %1 = vector.load %arg2[%c0_1, %c0_2] : memref<128x512xbf16, #tpu.memory_space<vmem>>, vector<128x512xbf16>
    %cst = arith.constant dense<0.000000e+00> : vector<128x512xf32>
    %2 = tpu.matmul %0, %1, %cst {dimension_numbers = #tpu.dot_dimension_numbers<[1], [0], [0], [1], [0, 0, 1, 1], [], []>} : vector<128x128xbf16>, vector<128x512xbf16>, vector<128x512xf32> -> vector<128x512xf32>
    %3 = arith.truncf %2 : vector<128x512xf32> to vector<128x512xbf16>
    %c0_3 = arith.constant 0 : index
    %c0_4 = arith.constant 0 : index
    %4 = vector.load %arg3[%c0_3, %c0_4] : memref<1x512xbf16, #tpu.memory_space<vmem>>, vector<1x512xbf16>
    %5 = vector.broadcast %4 : vector<1x512xbf16> to vector<128x512xbf16>
    %6 = arith.addf %3, %5 : vector<128x512xbf16>
    %cst_5 = arith.constant 0.000000e+00 : bf16
    %7 = vector.broadcast %cst_5 : bf16 to vector<128x512xbf16>
    %8 = arith.maximumf %6, %7 : vector<128x512xbf16>
    %c0_6 = arith.constant 0 : index
    %c0_7 = arith.constant 0 : index
    %9 = vector.load %arg4[%c0_6, %c0_7] : memref<512x256xbf16, #tpu.memory_space<vmem>>, vector<512x256xbf16>
    %cst_8 = arith.constant dense<0.000000e+00> : vector<128x256xf32>
    %10 = tpu.matmul %8, %9, %cst_8 {dimension_numbers = #tpu.dot_dimension_numbers<[1], [0], [0], [1], [0, 0, 1, 1], [], []>} : vector<128x512xbf16>, vector<512x256xbf16>, vector<128x256xf32> -> vector<128x256xf32>
    %11 = arith.truncf %10 : vector<128x256xf32> to vector<128x256xbf16>
    %c0_9 = arith.constant 0 : index
    %c0_10 = arith.constant 0 : index
    %12 = vector.load %arg5[%c0_9, %c0_10] : memref<1x256xbf16, #tpu.memory_space<vmem>>, vector<1x256xbf16>
    %13 = vector.broadcast %12 : vector<1x256xbf16> to vector<128x256xbf16>
    %14 = arith.addf %11, %13 : vector<128x256xbf16>
    %cst_11 = arith.constant 0.000000e+00 : bf16
    %15 = vector.broadcast %cst_11 : bf16 to vector<128x256xbf16>
    %16 = arith.maximumf %14, %15 : vector<128x256xbf16>
    %c0_12 = arith.constant 0 : index
    %c0_13 = arith.constant 0 : index
    %17 = vector.load %arg6[%c0_12, %c0_13] : memref<256x128xbf16, #tpu.memory_space<vmem>>, vector<256x128xbf16>
    %cst_14 = arith.constant dense<0.000000e+00> : vector<128x128xf32>
    %18 = tpu.matmul %16, %17, %cst_14 {dimension_numbers = #tpu.dot_dimension_numbers<[1], [0], [0], [1], [0, 0, 1, 1], [], []>} : vector<128x256xbf16>, vector<256x128xbf16>, vector<128x128xf32> -> vector<128x128xf32>
    %19 = arith.truncf %18 : vector<128x128xf32> to vector<128x128xbf16>
    %c0_15 = arith.constant 0 : index
    %c0_16 = arith.constant 0 : index
    %20 = vector.load %arg7[%c0_15, %c0_16] : memref<1x128xbf16, #tpu.memory_space<vmem>>, vector<1x128xbf16>
    %21 = vector.broadcast %20 : vector<1x128xbf16> to vector<128x128xbf16>
    %22 = arith.addf %19, %21 : vector<128x128xbf16>
    %cst_17 = arith.constant 0.000000e+00 : bf16
    %23 = vector.broadcast %cst_17 : bf16 to vector<128x128xbf16>
    %24 = arith.maximumf %22, %23 : vector<128x128xbf16>
    %c0_18 = arith.constant 0 : index
    %c0_19 = arith.constant 0 : index
    %25 = vector.load %arg8[%c0_18, %c0_19] : memref<128x128xbf16, #tpu.memory_space<vmem>>, vector<128x128xbf16>
    %cst_20 = arith.constant dense<0.000000e+00> : vector<128x128xf32>
    %26 = tpu.matmul %24, %25, %cst_20 {dimension_numbers = #tpu.dot_dimension_numbers<[1], [0], [0], [1], [0, 0, 1, 1], [], []>} : vector<128x128xbf16>, vector<128x128xbf16>, vector<128x128xf32> -> vector<128x128xf32>
    %27 = vector.extract_strided_slice %26 {offsets = [0, 0], sizes = [128, 1], strides = [1, 1]} : vector<128x128xf32> to vector<128x1xf32>
    %c0_21 = arith.constant 0 : index
    %c0_22 = arith.constant 0 : index
    %28 = vector.load %arg9[%c0_21, %c0_22] : memref<1x1xf32, #tpu.memory_space<vmem>>, vector<1x1xf32>
    %29 = vector.broadcast %28 : vector<1x1xf32> to vector<128x1xf32>
    %30 = arith.addf %27, %29 : vector<128x1xf32>
    %c0_23 = arith.constant 0 : index
    %c0_24 = arith.constant 0 : index
    %31 = vector.load %arg10[%c0_23, %c0_24] : memref<128x1xf32, #tpu.memory_space<vmem>>, vector<128x1xf32>
    tpu.vector_store %arg10[%c0_23, %c0_24], %30 {strides = array<i32>} : memref<128x1xf32, #tpu.memory_space<vmem>>, vector<128x1xf32>,
    return
  }
  func.func @transform_0(%arg0: i32) -> (i32, i32) {
    %c0_i32 = arith.constant 0 : i32
    %c0_i32_0 = arith.constant 0 : i32
    return %arg0, %c0_i32 : i32, i32
  }
  func.func @transform_1(%arg0: i32) -> (i32, i32) {
    %c0_i32 = arith.constant 0 : i32
    %c0_i32_0 = arith.constant 0 : i32
    %c0_i32_1 = arith.constant 0 : i32
    return %c0_i32, %c0_i32_0 : i32, i32
  }
  func.func @transform_2(%arg0: i32) -> (i32, i32) {
    %c0_i32 = arith.constant 0 : i32
    %c0_i32_0 = arith.constant 0 : i32
    %c0_i32_1 = arith.constant 0 : i32
    return %c0_i32, %c0_i32_0 : i32, i32
  }
  func.func @transform_3(%arg0: i32) -> (i32, i32) {
    %c0_i32 = arith.constant 0 : i32
    %c0_i32_0 = arith.constant 0 : i32
    %c0_i32_1 = arith.constant 0 : i32
    return %c0_i32, %c0_i32_0 : i32, i32
  }
  func.func @transform_4(%arg0: i32) -> (i32, i32) {
    %c0_i32 = arith.constant 0 : i32
    %c0_i32_0 = arith.constant 0 : i32
    %c0_i32_1 = arith.constant 0 : i32
    return %c0_i32, %c0_i32_0 : i32, i32
  }
  func.func @transform_5(%arg0: i32) -> (i32, i32) {
    %c0_i32 = arith.constant 0 : i32
    %c0_i32_0 = arith.constant 0 : i32
    %c0_i32_1 = arith.constant 0 : i32
    return %c0_i32, %c0_i32_0 : i32, i32
  }
  func.func @transform_6(%arg0: i32) -> (i32, i32) {
    %c0_i32 = arith.constant 0 : i32
    %c0_i32_0 = arith.constant 0 : i32
    %c0_i32_1 = arith.constant 0 : i32
    return %c0_i32, %c0_i32_0 : i32, i32
  }
  func.func @transform_7(%arg0: i32) -> (i32, i32) {
    %c0_i32 = arith.constant 0 : i32
    %c0_i32_0 = arith.constant 0 : i32
    %c0_i32_1 = arith.constant 0 : i32
    return %c0_i32, %c0_i32_0 : i32, i32
  }
  func.func @transform_8(%arg0: i32) -> (i32, i32) {
    %c0_i32 = arith.constant 0 : i32
    %c0_i32_0 = arith.constant 0 : i32
    %c0_i32_1 = arith.constant 0 : i32
    return %c0_i32, %c0_i32_0 : i32, i32
  }
  func.func @transform_9(%arg0: i32) -> (i32, i32) {
    %c0_i32 = arith.constant 0 : i32
    %c0_i32_0 = arith.constant 0 : i32
    return %arg0, %c0_i32 : i32, i32
  }
}

</mosaic_0001>

<bundles_post_ra>
// kernel: tpu_custom_call.1
= control target key start
LH: loop header
LB: loop body
LE: loop exit
PB: predicated region body
PF: predicated region fallthrough
CT: control target
= control target key end

     0   :  { %s2961_s0 = inlined_call_operand.hbm [shape: bf16[128,128], index: 0, kind: input, shape index: {}]   ;;  %s2962_s1 = inlined_call_operand.hbm [shape: bf16[128,512], index: 1, kind: input, shape index: {}]   ;;  %s2963_s2 = inlined_call_operand.vmem [shape: bf16[1,512], index: 2, kind: input, shape index: {}]   ;;  %s2964_s3 = inlined_call_operand.hbm [shape: bf16[512,256], index: 3, kind: input, shape index: {}]   ;;  %s2965_s4 = inlined_call_operand.vmem [shape: bf16[1,256], index: 4, kind: input, shape index: {}]   ;;  %s2966_s5 = inlined_call_operand.hbm [shape: bf16[256,128], index: 5, kind: input, shape index: {}]   ;;  %s2967_s6 = inlined_call_operand.vmem [shape: bf16[1,128], index: 6, kind: input, shape index: {}]   ;;  %s2968_s7 = inlined_call_operand.hbm [shape: bf16[128,128], index: 7, kind: input, shape index: {}]   ;;  %s2969_s8 = inlined_call_operand.<no memory space> [shape: f32[1,1], index: 8, kind: input, shape index: {}]   ;;  %s2970_s9 = inlined_call_operand.vmem [shape: f32[128,1], index: 9, kind: output, shape index: {}]  }
   0x1   :  { %v14_v0 = vstv %s2969_s8 }
   0x2   :  { %15 = vst [vmem:[#allocation2] sm:$0x1] %v14_v0 }
   0x3   :  { %16 = vsyncpa [#allocation4], 0 }
   0x4   :  { %17 = vsyncpa [#allocation6], 0 }
   0x5   :  { %18 = vsyncpa [#allocation9], 0  ;;  %s2476_s11 = smov [#allocation5]   ;;  %s2360_s15 = scalar_lea.hbm %s2962_s1, 4096 }
   0x6   :  { %s36_s12 = sshll.u32 %s2476_s11, 4  ;;  %p2361_p0 = scmp.ne.s32.totalorder %s2962_s1, %s2360_s15  ;;  %s37_s12 = int_to_ptr.vmem [resolvable:$true] %s36_s12 }
   0x7   :  { %p2364_p1 = scmp.lt.u32.totalorder %s2360_s15, %s2962_s1 }
   0x9   :  { %p2366_p2 = pnand %p2364_p1, %p2361_p0 }
   0xb   :  { %2369 = shalt.err (!%p2366_p2)
}
   0xc   :  { %s2370_s8 = scalar_lea.vmem %s37_s12, 4096  ;;  %p2375_p4 = scmp.lt.s32.totalorder %s37_s12, %s37_s12 }
   0xd   :  { %p2371_p3 = scmp.ne.s32.totalorder %s37_s12, %s2370_s8  ;;  %p2376_p5 = scmp.lt.s32.totalorder %s2370_s8, %s2370_s8 }
   0xf   :  { %p2377_p6 = por %p2376_p5, %p2375_p4 }
  0x11   :  { %p2378_p7 = pnand %p2377_p6, %p2371_p3 }
  0x13   :  { %2381 = shalt.err (!%p2378_p7)
}
  0x14   :  { %s2477_s20 = smov 256   ;;  %s2478_s21 = smov 16  }
  0x15   :  { %42 = dma.hbm_to_vmem [thread:$0]  %s2962_s1, 4096, %s37_s12, [#allocation6], %s2477_s20, %s2477_s20, %s2478_s21  }
  0x16   :  { %s2479_s24 = smov [#allocation8]   ;;  %s2480_s26 = smov [#allocation3]  }
  0x17   :  { %s64_s25 = sshll.u32 %s2479_s24, 4  ;;  %s24_s27 = sshll.u32 %s2480_s26, 4  ;;  %s65_s25 = int_to_ptr.vmem [resolvable:$true] %s64_s25  ;;  %s25_s27 = int_to_ptr.vmem [resolvable:$true] %s24_s27 }
  0x18   :  { %s2382_s30 = scalar_lea.hbm %s2966_s5, 2048 }
  0x19   :  { %p2383_p8 = scmp.ne.s32.totalorder %s2966_s5, %s2382_s30  ;;  %p2386_p9 = scmp.lt.u32.totalorder %s2382_s30, %s2966_s5 }
  0x1b   :  { %p2388_p10 = pnand %p2386_p9, %p2383_p8 }
  0x1d   :  { %2391 = shalt.err (!%p2388_p10)
}
  0x1e   :  { %s2392_s1 = scalar_lea.vmem %s65_s25, 2048  ;;  %p2397_p12 = scmp.lt.s32.totalorder %s65_s25, %s65_s25 }
  0x1f   :  { %p2393_p11 = scmp.ne.s32.totalorder %s65_s25, %s2392_s1  ;;  %p2398_p13 = scmp.lt.s32.totalorder %s2392_s1, %s2392_s1 }
  0x21   :  { %p2399_p0 = por %p2398_p13, %p2397_p12 }
  0x23   :  { %p2400_p1 = pnand %p2399_p0, %p2393_p11 }
  0x25   :  { %2403 = shalt.err (!%p2400_p1)
}
  0x26   :  { %s2481_s12 = smov 64   ;;  %s2482_s15 = smov 4  }
  0x27   :  { %70 = dma.hbm_to_vmem [thread:$0]  %s2966_s5, 2048, %s65_s25, [#allocation9], %s2481_s12, %s2481_s12, %s2482_s15  }
  0x28   :  { %s2404_s8 = scalar_lea.hbm %s2961_s0, 1024 }
  0x29   :  { %p2405_p2 = scmp.ne.s32.totalorder %s2961_s0, %s2404_s8  ;;  %p2408_p3 = scmp.lt.u32.totalorder %s2404_s8, %s2961_s0 }
  0x2b   :  { %p2410_p4 = pnand %p2408_p3, %p2405_p2 }
  0x2d   :  { %2413 = shalt.err (!%p2410_p4)
}
  0x2e   :  { %s2414_s24 = scalar_lea.vmem %s25_s27, 1024  ;;  %p2419_p6 = scmp.lt.s32.totalorder %s25_s27, %s25_s27 }
  0x2f   :  { %p2415_p5 = scmp.ne.s32.totalorder %s25_s27, %s2414_s24  ;;  %p2420_p7 = scmp.lt.s32.totalorder %s2414_s24, %s2414_s24 }
  0x31   :  { %p2421_p8 = por %p2420_p7, %p2419_p6 }
  0x33   :  { %p2422_p9 = pnand %p2421_p8, %p2415_p5 }
  0x35   :  { %2425 = shalt.err (!%p2422_p9)
}
  0x36   :  { %30 = dma.hbm_to_vmem [thread:$0]  %s2961_s0, 1024, %s25_s27, [#allocation4], %s2481_s12, %s2481_s12, %s2482_s15  }
  0x37   :  { %s2483_s26 = smov [#allocation7]   ;;  %s2426_s10 = scalar_lea.hbm %s2964_s3, 8192 }
  0x38   :  { %s50_s28 = sshll.u32 %s2483_s26, 4  ;;  %p2427_p10 = scmp.ne.s32.totalorder %s2964_s3, %s2426_s10  ;;  %s51_s28 = int_to_ptr.vmem [resolvable:$true] %s50_s28 }
  0x39   :  { %p2430_p11 = scmp.lt.u32.totalorder %s2426_s10, %s2964_s3 }
  0x3b   :  { %p2432_p12 = pnand %p2430_p11, %p2427_p10 }
  0x3d   :  { %2435 = shalt.err (!%p2432_p12)
}
  0x3e   :  { %s2436_s16 = scalar_lea.vmem %s51_s28, 8192  ;;  %p2441_p0 = scmp.lt.s32.totalorder %s51_s28, %s51_s28 }
  0x3f   :  { %p2437_p13 = scmp.ne.s32.totalorder %s51_s28, %s2436_s16  ;;  %p2442_p1 = scmp.lt.s32.totalorder %s2436_s16, %s2436_s16 }
  0x41   :  { %p2443_p2 = por %p2442_p1, %p2441_p0 }
  0x43   :  { %p2444_p3 = pnand %p2443_p2, %p2437_p13 }
  0x45   :  { %2447 = shalt.err (!%p2444_p3)
}
  0x46   :  { %s2484_s0 = smov 128   ;;  %s2485_s27 = smov 8  }
  0x47   :  { %56 = dma.hbm_to_vmem [thread:$0]  %s2964_s3, 8192, %s51_s28, [#allocation6], %s2484_s0, %s2484_s0, %s2485_s27  }
  0x48   :  { %s2486_s19 = smov [#allocation10]   ;;  %s2448_s22 = scalar_lea.hbm %s2968_s7, 1024 }
  0x49   :  { %s78_s8 = sshll.u32 %s2486_s19, 4  ;;  %p2449_p4 = scmp.ne.s32.totalorder %s2968_s7, %s2448_s22  ;;  %s79_s8 = int_to_ptr.vmem [resolvable:$true] %s78_s8 }
  0x4a   :  { %p2452_p5 = scmp.lt.u32.totalorder %s2448_s22, %s2968_s7 }
  0x4c   :  { %p2454_p6 = pnand %p2452_p5, %p2449_p4 }
  0x4e   :  { %2457 = shalt.err (!%p2454_p6)
}
  0x4f   :  { %s2458_s26 = scalar_lea.vmem %s79_s8, 1024  ;;  %p2463_p8 = scmp.lt.s32.totalorder %s79_s8, %s79_s8 }
  0x50   :  { %p2459_p7 = scmp.ne.s32.totalorder %s79_s8, %s2458_s26  ;;  %p2464_p9 = scmp.lt.s32.totalorder %s2458_s26, %s2458_s26 }
  0x52   :  { %p2465_p10 = por %p2464_p9, %p2463_p8 }
  0x54   :  { %p2466_p11 = pnand %p2465_p10, %p2459_p7 }
  0x56   :  { %2469 = shalt.err (!%p2466_p11)
}
  0x57   :  { %84 = dma.hbm_to_vmem [thread:$0]  %s2968_s7, 1024, %s79_s8, [#allocation9], %s2481_s12, %s2481_s12, %s2482_s15  }
  0x58   :  { %2470 = dma.done.wait [#allocation4], 1024  }
  0x59   :  { %2471 = vsyncadd [#allocation4], 4294966272 }
  0x5a   :  { %2472 = dma.done.wait [#allocation6], 12288  }
  0x5b   :  { %2473 = vsyncadd [#allocation6], 4294955008 }
  0x5c   :  { %2474 = dma.done.wait [#allocation9], 3072  }
  0x5d   :  { %2475 = vsyncadd [#allocation9], 4294964224  ;;  %v2487_v1 = vmov 0   ;;  %v2184_v2 = vld [vmem:[#allocation5 + $0x4] ss:$16 sps:$4 sm:$0xff]   ;;  %v2209_v37 = vld [vmem:[#allocation3 + $0x8] sm:$0xff]  }
  0x5e   :  { %391 = vmatprep.mubr.bf16.mxu0 %v2487_v1  ;;  %504 = vmatprep.mubr.bf16.mxu1 %v2487_v1  ;;  %v2186_v3 = vld [vmem:[#allocation5] ss:$16 sps:$4 sm:$0xff]   ;;  %v2187_v4 = vld [vmem:[#allocation5 + $0x24] ss:$16 sps:$4 sm:$0xff]   ;;  %v2212_v12 = vld [vmem:[#allocation5 + $0xc] ss:$16 sps:$4 sm:$0xff]  }
  0x5f   :  { %359 = vmatprep.subr.bf16.mxu0 %v2184_v2  ;;  %v2189_v5 = vld [vmem:[#allocation5 + $0x20] ss:$16 sps:$4 sm:$0xff]   ;;  %v2190_v6 = vld [vmem:[#allocation5 + $0x44] ss:$16 sps:$4 sm:$0xff]   ;;  %v2214_v13 = vld [vmem:[#allocation5 + $0x8] ss:$16 sps:$4 sm:$0xff]   ;;  %472 = vmatprep.subr.bf16.mxu1 %v2212_v12 }
  0x60   :  { %360 = vmatpush1.bf16.msra.mxu0 %v2186_v3  ;;  %v2192_v7 = vld [vmem:[#allocation5 + $0x40] ss:$16 sps:$4 sm:$0xff]   ;;  %v2193_v8 = vld [vmem:[#allocation5 + $0x64] ss:$16 sps:$4 sm:$0xff]   ;;  %v2216_v15 = vld [vmem:[#allocation5 + $0x2c] ss:$16 sps:$4 sm:$0xff]   ;;  %473 = vmatpush1.bf16.msra.mxu1 %v2214_v13 }
  0x61   :  { %361 = vmatprep.subr.bf16.mxu0 %v2187_v4  ;;  %v2195_v9 = vld [vmem:[#allocation5 + $0x60] ss:$16 sps:$4 sm:$0xff]   ;;  %v2196_v10 = vld [vmem:[#allocation5 + $0x84] ss:$16 sps:$4 sm:$0xff]   ;;  %v2218_v16 = vld [vmem:[#allocation5 + $0x28] ss:$16 sps:$4 sm:$0xff]   ;;  %474 = vmatprep.subr.bf16.mxu1 %v2216_v15 }
  0x62   :  { %v2198_v11 = vld [vmem:[#allocation5 + $0x80] ss:$16 sps:$4 sm:$0xff]   ;;  %v2199_v14 = vld [vmem:[#allocation5 + $0xa4] ss:$16 sps:$4 sm:$0xff]   ;;  %v2219_v18 = vld [vmem:[#allocation5 + $0x4c] ss:$16 sps:$4 sm:$0xff]  }
  0x63   :  { %v2201_v17 = vld [vmem:[#allocation5 + $0xa0] ss:$16 sps:$4 sm:$0xff]   ;;  %v2202_v19 = vld [vmem:[#allocation5 + $0xc4] ss:$16 sps:$4 sm:$0xff]   ;;  %v2221_v21 = vld [vmem:[#allocation5 + $0x48] ss:$16 sps:$4 sm:$0xff]  }
  0x64   :  { %362 = vmatpush1.bf16.msra.mxu0 %v2189_v5  ;;  %v2204_v20 = vld [vmem:[#allocation5 + $0xc0] ss:$16 sps:$4 sm:$0xff]   ;;  %475 = vmatpush1.bf16.msra.mxu1 %v2218_v16  ;;  %v2223_v22 = vld [vmem:[#allocation5 + $0x6c] ss:$16 sps:$4 sm:$0xff]   ;;  %v2205_v23 = vld [vmem:[#allocation5 + $0xe4] ss:$16 sps:$4 sm:$0xff]  }
  0x65   :  { %363 = vmatprep.subr.bf16.mxu0 %v2190_v6  ;;  %476 = vmatprep.subr.bf16.mxu1 %v2219_v18  ;;  %v2207_v24 = vld [vmem:[#allocation5 + $0xe0] ss:$16 sps:$4 sm:$0xff]   ;;  %v2225_v25 = vld [vmem:[#allocation5 + $0x68] ss:$16 sps:$4 sm:$0xff]   ;;  %v2226_v26 = vld [vmem:[#allocation5 + $0x8c] ss:$16 sps:$4 sm:$0xff]  }
  0x66   :  { %v2208_v27 = vld [vmem:[#allocation3] sm:$0xff]   ;;  %v2228_v28 = vld [vmem:[#allocation5 + $0x88] ss:$16 sps:$4 sm:$0xff]   ;;  %v2230_v30 = vld [vmem:[#allocation5 + $0xac] ss:$16 sps:$4 sm:$0xff]   ;;  %vm1872_vm0 = vcmask 7168  }
  0x67   :  { %v2242_v29 = vld [vmem:[#allocation7 + $0x4] ss:$8 sps:$4 sm:$0xff]   ;;  %v2240_v31 = vld [vmem:[#allocation7] ss:$8 sps:$4 sm:$0xff]   ;;  %v2245_v32 = vld [vmem:[#allocation7 + $0x14] ss:$8 sps:$4 sm:$0xff]  }
  0x68   :  { %364 = vmatpush1.bf16.msra.mxu0 %v2192_v7  ;;  %477 = vmatpush1.bf16.msra.mxu1 %v2221_v21  ;;  %v2232_v33 = vld [vmem:[#allocation5 + $0xa8] ss:$16 sps:$4 sm:$0xff]   ;;  %v2233_v34 = vld [vmem:[#allocation5 + $0xcc] ss:$16 sps:$4 sm:$0xff]   ;;  %v2210_v45 = vld [vmem:[#allocation3 + $0x10] sm:$0xff]  }
  0x69   :  { %365 = vmatprep.subr.bf16.mxu0 %v2193_v8  ;;  %478 = vmatprep.subr.bf16.mxu1 %v2223_v22  ;;  %v2243_v35 = vld [vmem:[#allocation7 + $0x10] ss:$8 sps:$4 sm:$0xff]   ;;  %v2248_v36 = vld [vmem:[#allocation7 + $0x24] ss:$8 sps:$4 sm:$0xff]   ;;  %v2246_v40 = vld [vmem:[#allocation7 + $0x20] ss:$8 sps:$4 sm:$0xff]  }
  0x6a   :  { %v2235_v38 = vld [vmem:[#allocation5 + $0xc8] ss:$16 sps:$4 sm:$0xff]   ;;  %v2237_v39 = vld [vmem:[#allocation5 + $0xec] ss:$16 sps:$4 sm:$0xff]   ;;  %v2215_v55 = vld [vmem:[#allocation3 + $0x20] sm:$0xff]  }
  0x6b   :  { %v2251_v41 = vld [vmem:[#allocation7 + $0x34] ss:$8 sps:$4 sm:$0xff]   ;;  %v2239_v42 = vld [vmem:[#allocation5 + $0xe8] ss:$16 sps:$4 sm:$0xff]   ;;  %v2254_v44 = vld [vmem:[#allocation7 + $0x44] ss:$8 sps:$4 sm:$0xff]  }
  0x6c   :  { %366 = vmatpush1.bf16.msra.mxu0 %v2195_v9  ;;  %479 = vmatpush1.bf16.msra.mxu1 %v2225_v25  ;;  %v2249_v43 = vld [vmem:[#allocation7 + $0x30] ss:$8 sps:$4 sm:$0xff]   ;;  %v2252_v46 = vld [vmem:[#allocation7 + $0x40] ss:$8 sps:$4 sm:$0xff]   ;;  %v2257_v47 = vld [vmem:[#allocation7 + $0x54] ss:$8 sps:$4 sm:$0xff]  }
  0x6d   :  { %367 = vmatprep.subr.bf16.mxu0 %v2196_v10  ;;  %480 = vmatprep.subr.bf16.mxu1 %v2226_v26  ;;  %v2255_v48 = vld [vmem:[#allocation7 + $0x50] ss:$8 sps:$4 sm:$0xff]   ;;  %v2260_v49 = vld [vmem:[#allocation7 + $0x64] ss:$8 sps:$4 sm:$0xff]   ;;  %v2258_v51 = vld [vmem:[#allocation7 + $0x60] ss:$8 sps:$4 sm:$0xff]  }
  0x6e   :  { %v2211_v50 = vld [vmem:[#allocation3 + $0x18] sm:$0xff]   ;;  %v2266_v54 = vld [vmem:[#allocation7 + $0x84] ss:$8 sps:$4 sm:$0xff]   ;;  %v2264_v56 = vld [vmem:[#allocation7 + $0x80] ss:$8 sps:$4 sm:$0xff]  }
  0x6f   :  { %v2263_v52 = vld [vmem:[#allocation7 + $0x74] ss:$8 sps:$4 sm:$0xff]   ;;  %v2261_v53 = vld [vmem:[#allocation7 + $0x70] ss:$8 sps:$4 sm:$0xff]   ;;  %v2272_v59 = vld [vmem:[#allocation7 + $0xa4] ss:$8 sps:$4 sm:$0xff]  }
  0x70   :  { %368 = vmatpush1.bf16.msra.mxu0 %v2198_v11  ;;  %481 = vmatpush1.bf16.msra.mxu1 %v2228_v28  ;;  %v2269_v57 = vld [vmem:[#allocation7 + $0x94] ss:$8 sps:$4 sm:$0xff]   ;;  %v2267_v58 = vld [vmem:[#allocation7 + $0x90] ss:$8 sps:$4 sm:$0xff]   ;;  %v2222_v60 = vld [vmem:[#allocation3 + $0x28] sm:$0xff]  }
  0x71   :  { %369 = vmatprep.subr.bf16.mxu0 %v2199_v14  ;;  %482 = vmatprep.subr.bf16.mxu1 %v2230_v30  ;;  %v2270_v61 = vld [vmem:[#allocation7 + $0xa0] ss:$8 sps:$4 sm:$0xff]   ;;  %v2275_v62 = vld [vmem:[#allocation7 + $0xb4] ss:$8 sps:$4 sm:$0xff]   ;;  %v2273_v63 = vld [vmem:[#allocation7 + $0xb0] ss:$8 sps:$4 sm:$0xff]   ;;  %v630_v14 = vlaneseq }
  0x72   :  { %v2278_v0 = vld [vmem:[#allocation7 + $0xc4] ss:$8 sps:$4 sm:$0xff]   ;;  %v2229_v2 = vld [vmem:[#allocation3 + $0x30] sm:$0xff]   ;;  %v2276_v3 = vld [vmem:[#allocation7 + $0xc0] ss:$8 sps:$4 sm:$0xff]  }
  0x73   :  { %v2281_v4 = vld [vmem:[#allocation7 + $0xd4] ss:$8 sps:$4 sm:$0xff]   ;;  %v2279_v5 = vld [vmem:[#allocation7 + $0xd0] ss:$8 sps:$4 sm:$0xff]   ;;  %v2284_v7 = vld [vmem:[#allocation7 + $0xe4] ss:$8 sps:$4 sm:$0xff]  }
  0x74   :  { %370 = vmatpush1.bf16.msra.mxu0 %v2201_v17  ;;  %483 = vmatpush1.bf16.msra.mxu1 %v2232_v33  ;;  %v2236_v6 = vld [vmem:[#allocation3 + $0x38] sm:$0xff]   ;;  %v2282_v8 = vld [vmem:[#allocation7 + $0xe0] ss:$8 sps:$4 sm:$0xff]   ;;  %v2290_v11 = vld [vmem:[#allocation7 + $0x104] ss:$8 sps:$4 sm:$0xff]   ;;  %v631_v16 = vshrl.u32 %v630_v14, 7 }
  0x75   :  { %371 = vmatprep.subr.bf16.mxu0 %v2202_v19  ;;  %484 = vmatprep.subr.bf16.mxu1 %v2233_v34  ;;  %v2287_v9 = vld [vmem:[#allocation7 + $0xf4] ss:$8 sps:$4 sm:$0xff]   ;;  %v2285_v10 = vld [vmem:[#allocation7 + $0xf0] ss:$8 sps:$4 sm:$0xff]   ;;  %v2488_v12 = vmov 1966171168  }
  0x76   :  { %v628_v13 = vunpack.c.l.s4 %v2488_v12  ;;  %v1936_v17 = vld.sshfl [vmem:[%s2963_s2] sm:$0x33 pattern:$0x75316420]  ;;  %v2338_v34 = vld [vmem:[#allocation8 + $0x48] sm:$0xff]  }
  0x77   :  { %v626_v19 = vcombine.high %v1936_v17, %v1936_v17  ;;  %v2337_v33 = vld [vmem:[#allocation8] sm:$0xff]  }
  0x78   :  { %372 = vmatpush1.bf16.msra.mxu0 %v2204_v20  ;;  %485 = vmatpush1.bf16.msra.mxu1 %v2235_v38  ;;  %v629_v15 = vunpack.c.0.s8 %v628_v13  ;;  %v2339_v38 = vld [vmem:[#allocation8 + $0x8] sm:$0xff]   ;;  %v2297_v13 = vld [vmem:[#allocation7 + $0x130] ss:$8 sps:$4 sm:$0xff]  }
  0x79   :  { %373 = vmatprep.subr.bf16.mxu0 %v2205_v23  ;;  %486 = vmatprep.subr.bf16.mxu1 %v2237_v39  ;;  %v2640_v23 = vsub.s32 0, %v631_v16  ;;  %v2340_v39 = vld [vmem:[#allocation8 + $0x50] sm:$0xff]  }
  0x7a   :  { %v2630_v18 = vsub.s32 %v629_v15, %v631_v16  ;;  %v2302_v15 = vld [vmem:[#allocation7 + $0x144] ss:$8 sps:$4 sm:$0xff]  }
  0x7c   :  { %374 = vmatpush1.bf16.msra.mxu0 %v2207_v24  ;;  %487 = vmatpush1.bf16.msra.mxu1 %v2239_v42  ;;  %v2633_v20 = vrot.slane %v1936_v17, %v2630_v18  ;;  %v2636_v21 = vrot.slane %v626_v19, %v2630_v18  ;;  %v2288_v42 = vld [vmem:[#allocation7 + $0x100] ss:$8 sps:$4 sm:$0xff]  }
  0x7d   :  { %1119 = vmatprep.subr.bf16.mxu0 %v2242_v29  ;;  %v2347_v17 = vld [vmem:[#allocation8 + $0x28] sm:$0xff]  }
  0x7e   :  { %v644_v22 = vpack.i.b16 %v2633_v20, %v2633_v20  ;;  %v651_v24 = vpack.i.b16 %v2636_v21, %v2636_v21 }
  0x7f   :  { %392 = vmatmul.mubr.bf16.vlgmr.msra.gmra.mrb[0].mxu0 %v2208_v27  ;;  %505 = vmatmul.mubr.bf16.vlgmr.msra.gmra.mrb[0].mxu1 %v2208_v27 }
  0x80   :  { %401 = vmatprep.mubr.bf16.mxu0 %v2487_v1  ;;  %1120 = vmatpush1.bf16.msra.mxu0 %v2240_v31  ;;  %v2645_v27 = vrot.slane %v644_v22, %v2640_v23  ;;  %v2648_v29 = vrot.slane %v651_v24, %v2640_v23  ;;  %v2348_v22 = vld [vmem:[#allocation8 + $0x70] sm:$0xff]  }
  0x81   :  { %1121 = vmatprep.subr.bf16.mxu0 %v2245_v32  ;;  %514 = vmatprep.mubr.bf16.mxu1 %v2487_v1  ;;  %v2336_v32 = vld [vmem:[#allocation8 + $0x40] sm:$0xff]  }
  0x82   :  { %2027 = vmatprep.subr.bf16.mxu1 %v2336_v32  ;;  %v2305_v32 = vld [vmem:[#allocation7 + $0x154] ss:$8 sps:$4 sm:$0xff]  }
  0x83   :  { %2028 = vmatpush3.bf16.msra.mxu1 %v2337_v33 }
  0x84   :  { %1122 = vmatpush1.bf16.msra.mxu0 %v2243_v35  ;;  %2029 = vmatprep.subr.bf16.mxu1 %v2338_v34 }
  0x85   :  { %1123 = vmatprep.subr.bf16.mxu0 %v2248_v36 }
  0x87   :  { %402 = vmatmul.mubr.bf16.gmra.mrb[4].mxu0 %v2209_v37  ;;  %515 = vmatmul.mubr.bf16.gmra.mrb[4].mxu1 %v2209_v37 }
  0x88   :  { %411 = vmatprep.mubr.bf16.mxu0 %v2487_v1  ;;  %1124 = vmatpush1.bf16.msra.mxu0 %v2246_v40 }
  0x89   :  { %1125 = vmatprep.subr.bf16.mxu0 %v2251_v41  ;;  %524 = vmatprep.mubr.bf16.mxu1 %v2487_v1 }
  0x8a   :  { %2030 = vmatpush3.bf16.msra.mxu1 %v2339_v38 }
  0x8b   :  { %2031 = vmatprep.subr.bf16.mxu1 %v2340_v39 }
  0x8c   :  { %1126 = vmatpush1.bf16.msra.mxu0 %v2249_v43 }
  0x8d   :  { %1127 = vmatprep.subr.bf16.mxu0 %v2254_v44 }
  0x8f   :  { %412 = vmatmul.mubr.bf16.gmra.mrb[8].mxu0 %v2210_v45  ;;  %525 = vmatmul.mubr.bf16.gmra.mrb[8].mxu1 %v2210_v45  ;;  %v2293_v45 = vld [vmem:[#allocation7 + $0x114] ss:$8 sps:$4 sm:$0xff]  }
  0x90   :  { %421 = vmatprep.mubr.bf16.mxu0 %v2487_v1  ;;  %1128 = vmatpush1.bf16.msra.mxu0 %v2252_v46 }
  0x91   :  { %1129 = vmatprep.subr.bf16.mxu0 %v2257_v47  ;;  %534 = vmatprep.mubr.bf16.mxu1 %v2487_v1  ;;  %v2341_v47 = vld [vmem:[#allocation8 + $0x10] sm:$0xff]  }
  0x92   :  { %2032 = vmatpush3.bf16.msra.mxu1 %v2341_v47 }
  0x94   :  { %1130 = vmatpush1.bf16.msra.mxu0 %v2255_v48 }
  0x95   :  { %1131 = vmatprep.subr.bf16.mxu0 %v2260_v49 }
  0x97   :  { %422 = vmatmul.mubr.bf16.gmra.mrb[12].mxu0 %v2211_v50  ;;  %535 = vmatmul.mubr.bf16.gmra.mrb[12].mxu1 %v2211_v50  ;;  %v2342_v50 = vld [vmem:[#allocation8 + $0x58] sm:$0xff]  }
  0x98   :  { %431 = vmatprep.mubr.bf16.mxu0 %v2487_v1  ;;  %1132 = vmatpush1.bf16.msra.mxu0 %v2258_v51 }
  0x99   :  { %1133 = vmatprep.subr.bf16.mxu0 %v2263_v52  ;;  %544 = vmatprep.mubr.bf16.mxu1 %v2487_v1  ;;  %v2291_v52 = vld [vmem:[#allocation7 + $0x110] ss:$8 sps:$4 sm:$0xff]  }
  0x9a   :  { %2033 = vmatprep.subr.bf16.mxu1 %v2342_v50 }
  0x9c   :  { %1134 = vmatpush1.bf16.msra.mxu0 %v2261_v53 }
  0x9d   :  { %1135 = vmatprep.subr.bf16.mxu0 %v2266_v54  ;;  %v2296_v54 = vld [vmem:[#allocation7 + $0x124] ss:$8 sps:$4 sm:$0xff]  }
  0x9f   :  { %432 = vmatmul.mubr.bf16.gmra.mrb[16].mxu0 %v2215_v55  ;;  %545 = vmatmul.mubr.bf16.gmra.mrb[16].mxu1 %v2215_v55 }
  0xa0   :  { %441 = vmatprep.mubr.bf16.mxu0 %v2487_v1  ;;  %1136 = vmatpush1.bf16.msra.mxu0 %v2264_v56  ;;  %v2343_v56 = vld [vmem:[#allocation8 + $0x18] sm:$0xff]  }
  0xa1   :  { %1137 = vmatprep.subr.bf16.mxu0 %v2269_v57  ;;  %554 = vmatprep.mubr.bf16.mxu1 %v2487_v1 }
  0xa2   :  { %2034 = vmatpush3.bf16.msra.mxu1 %v2343_v56 }
  0xa4   :  { %1138 = vmatpush1.bf16.msra.mxu0 %v2267_v58  ;;  %v2344_v58 = vld [vmem:[#allocation8 + $0x60] sm:$0xff]  }
  0xa5   :  { %1139 = vmatprep.subr.bf16.mxu0 %v2272_v59  ;;  %2035 = vmatprep.subr.bf16.mxu1 %v2344_v58 }
  0xa7   :  { %442 = vmatmul.mubr.bf16.gmra.mrb[20].mxu0 %v2222_v60  ;;  %555 = vmatmul.mubr.bf16.gmra.mrb[20].mxu1 %v2222_v60 }
  0xa8   :  { %451 = vmatprep.mubr.bf16.mxu0 %v2487_v1  ;;  %1140 = vmatpush1.bf16.msra.mxu0 %v2270_v61  ;;  %v2294_v61 = vld [vmem:[#allocation7 + $0x120] ss:$8 sps:$4 sm:$0xff]  }
  0xa9   :  { %1141 = vmatprep.subr.bf16.mxu0 %v2275_v62  ;;  %564 = vmatprep.mubr.bf16.mxu1 %v2487_v1 }
  0xac   :  { %1142 = vmatpush1.bf16.msra.mxu0 %v2273_v63 }
  0xad   :  { %1143 = vmatprep.subr.bf16.mxu0 %v2278_v0 }
  0xaf   :  { %452 = vmatmul.mubr.bf16.gmra.mrb[24].mxu0 %v2229_v2  ;;  %565 = vmatmul.mubr.bf16.gmra.mrb[24].mxu1 %v2229_v2  ;;  %v2299_v2 = vld [vmem:[#allocation7 + $0x134] ss:$8 sps:$4 sm:$0xff]  }
  0xb0   :  { %461 = vmatprep.mubr.bf16.mxu0 %v2487_v1  ;;  %1144 = vmatpush1.bf16.msra.mxu0 %v2276_v3 }
  0xb1   :  { %1145 = vmatprep.subr.bf16.mxu0 %v2281_v4  ;;  %574 = vmatprep.mubr.bf16.mxu1 %v2487_v1 }
  0xb4   :  { %1146 = vmatpush1.bf16.msra.mxu0 %v2279_v5 }
  0xb5   :  { %1147 = vmatprep.subr.bf16.mxu0 %v2284_v7  ;;  %v2345_v7 = vld [vmem:[#allocation8 + $0x20] sm:$0xff]  }
  0xb6   :  { %2036 = vmatpush3.bf16.msra.mxu1 %v2345_v7 }
  0xb7   :  { %462 = vmatmul.mubr.bf16.gmra.mrb[28].mxu0 %v2236_v6  ;;  %575 = vmatmul.mubr.bf16.gmra.mrb[28].mxu1 %v2236_v6 }
  0xb8   :  { %1148 = vmatpush1.bf16.msra.mxu0 %v2282_v8 }
  0xb9   :  { %1149 = vmatprep.subr.bf16.mxu0 %v2287_v9 }
  0xbc   :  { %1150 = vmatpush1.bf16.msra.mxu0 %v2285_v10 }
  0xbd   :  { %1232 = vmatprep.subr.bf16.mxu0 %v2290_v11  ;;  %v2346_v11 = vld [vmem:[#allocation8 + $0x68] sm:$0xff]  }
  0xbe   :  { %2037 = vmatprep.subr.bf16.mxu1 %v2346_v11 }
  0xbf   :  { %2038 = vmatpush3.bf16.msra.mxu1 %v2347_v17 }
  0xc0   :  { %2039 = vmatprep.subr.bf16.mxu1 %v2348_v22 }
 0x152   :  { %v393_v25 = vpop.f32.mrb[0].mxu0  ;;  %v2656_v57 = vpop.f32.mrb[0].mxu1 }
 0x153   :  { %v395_v26 = vpop.f32.mrb[1].mxu0  ;;  %v2659_v62 = vpop.f32.mrb[1].mxu1 }
 0x154   :  { %v397_v28 = vpop.f32.mrb[2].mxu0  ;;  %v2662_v3 = vpop.f32.mrb[2].mxu1 }
 0x155   :  { %v585_v30 = vpack.c.bf16 %v397_v28, %v393_v25  ;;  %v399_v31 = vpop.f32.mrb[3].mxu0  ;;  %v587_v5 = vpack.c.bf16 %v2662_v3, %v2656_v57  ;;  %v2666_v6 = vpop.f32.mrb[3].mxu1 }
 0x156   :  { %v586_v35 = vpack.c.bf16 %v399_v31, %v395_v26  ;;  %v588_v10 = vpack.c.bf16 %v2666_v6, %v2659_v62  ;;  %v2300_v26 = vld [vmem:[#allocation7 + $0x140] ss:$8 sps:$4 sm:$0xff]   ;;  %v2335_v6 = vld [vmem:[#allocation7 + $0x1f4] ss:$8 sps:$4 sm:$0xff]  }
 0x157   :  { %v671_v36 = vadd.bf16 %v2645_v27, %v585_v30 }
 0x158   :  { %v672_v37 = vadd.bf16 %v2648_v29, %v586_v35 }
 0x159   :  { %v703_v43 = vmax.bf16 %v2487_v1, %v671_v36 }
 0x15a   :  { %v403_v40 = vpop.f32.mrb[4].mxu0  ;;  %v704_v41 = vmax.bf16 %v2487_v1, %v672_v37  ;;  %v2672_v19 = vpop.f32.mrb[4].mxu1  ;;  %v2349_v37 = vld [vmem:[#allocation8 + $0x30] sm:$0xff]  }
 0x15b   :  { %v405_v44 = vpop.f32.mrb[5].mxu0  ;;  %v2675_v28 = vpop.f32.mrb[5].mxu1  ;;  %2040 = vmatpush3.bf16.msra.mxu1 %v2349_v37 }
 0x15c   :  { %v407_v46 = vpop.f32.mrb[6].mxu0  ;;  %1151 = vmatprep.mubr.bf16.mxu0 %v704_v41  ;;  %v2678_v33 = vpop.f32.mrb[6].mxu1 }
 0x15d   :  { %v589_v48 = vpack.c.bf16 %v407_v46, %v403_v40  ;;  %v409_v49 = vpop.f32.mrb[7].mxu0  ;;  %1152 = vmatmul.mubr.bf16.vlgmr.msra.gmra.mrb[32].mxu0 %v703_v43  ;;  %v591_v35 = vpack.c.bf16 %v2678_v33, %v2672_v19  ;;  %v2682_v36 = vpop.f32.mrb[7].mxu1 }
 0x15e   :  { %v590_v51 = vpack.c.bf16 %v409_v49, %v405_v44  ;;  %1233 = vmatpush1.bf16.msra.mxu0 %v2288_v42  ;;  %v592_v40 = vpack.c.bf16 %v2682_v36, %v2675_v28  ;;  %v2303_v42 = vld [vmem:[#allocation7 + $0x150] ss:$8 sps:$4 sm:$0xff]   ;;  %v2308_v44 = vld [vmem:[#allocation7 + $0x164] ss:$8 sps:$4 sm:$0xff]   ;;  %v2306_v49 = vld [vmem:[#allocation7 + $0x160] ss:$8 sps:$4 sm:$0xff]  }
 0x15f   :  { %v675_v53 = vadd.bf16 %v2645_v27, %v589_v48  ;;  %1234 = vmatprep.subr.bf16.mxu0 %v2293_v45 }
 0x160   :  { %v676_v55 = vadd.bf16 %v2648_v29, %v590_v51 }
 0x161   :  { %v707_v0 = vmax.bf16 %v2487_v1, %v675_v53  ;;  %v2311_v53 = vld [vmem:[#allocation7 + $0x174] ss:$8 sps:$4 sm:$0xff]  }
 0x162   :  { %1235 = vmatpush1.bf16.msra.mxu0 %v2291_v52  ;;  %v413_v59 = vpop.f32.mrb[8].mxu0  ;;  %v708_v60 = vmax.bf16 %v2487_v1, %v676_v55  ;;  %v2688_v46 = vpop.f32.mrb[8].mxu1 }
 0x163   :  { %v415_v63 = vpop.f32.mrb[9].mxu0  ;;  %1236 = vmatprep.subr.bf16.mxu0 %v2296_v54  ;;  %v2691_v50 = vpop.f32.mrb[9].mxu1 }
 0x164   :  { %v417_v4 = vpop.f32.mrb[10].mxu0  ;;  %1161 = vmatprep.mubr.bf16.mxu0 %v708_v60  ;;  %v2694_v54 = vpop.f32.mrb[10].mxu1 }
 0x165   :  { %v593_v8 = vpack.c.bf16 %v417_v4, %v413_v59  ;;  %v419_v9 = vpop.f32.mrb[11].mxu0  ;;  %1162 = vmatmul.mubr.bf16.gmra.mrb[36].mxu0 %v707_v0  ;;  %v595_v56 = vpack.c.bf16 %v2694_v54, %v2688_v46  ;;  %v2698_v58 = vpop.f32.mrb[11].mxu1  ;;  %v2309_v0 = vld [vmem:[#allocation7 + $0x170] ss:$8 sps:$4 sm:$0xff]   ;;  %v2314_v4 = vld [vmem:[#allocation7 + $0x184] ss:$8 sps:$4 sm:$0xff]  }
 0x166   :  { %v594_v12 = vpack.c.bf16 %v419_v9, %v415_v63  ;;  %1237 = vmatpush1.bf16.msra.mxu0 %v2294_v61  ;;  %v596_v61 = vpack.c.bf16 %v2698_v58, %v2691_v50 }
 0x167   :  { %v679_v14 = vadd.bf16 %v2645_v27, %v593_v8  ;;  %1238 = vmatprep.subr.bf16.mxu0 %v2299_v2 }
 0x168   :  { %v680_v16 = vadd.bf16 %v2648_v29, %v594_v12  ;;  %v2312_v12 = vld [vmem:[#allocation7 + $0x180] ss:$8 sps:$4 sm:$0xff]  }
 0x169   :  { %v711_v31 = vmax.bf16 %v2487_v1, %v679_v14 }
 0x16a   :  { %1239 = vmatpush1.bf16.msra.mxu0 %v2297_v13  ;;  %v423_v24 = vpop.f32.mrb[12].mxu0  ;;  %v712_v25 = vmax.bf16 %v2487_v1, %v680_v16  ;;  %v2704_v8 = vpop.f32.mrb[12].mxu1  ;;  %v2317_v16 = vld [vmem:[#allocation7 + $0x194] ss:$8 sps:$4 sm:$0xff]  }
 0x16b   :  { %v425_v30 = vpop.f32.mrb[13].mxu0  ;;  %1240 = vmatprep.subr.bf16.mxu0 %v2302_v15  ;;  %v2707_v13 = vpop.f32.mrb[13].mxu1 }
 0x16c   :  { %v427_v34 = vpop.f32.mrb[14].mxu0  ;;  %1171 = vmatprep.mubr.bf16.mxu0 %v712_v25  ;;  %v2710_v17 = vpop.f32.mrb[14].mxu1 }
 0x16d   :  { %v597_v38 = vpack.c.bf16 %v427_v34, %v423_v24  ;;  %v429_v39 = vpop.f32.mrb[15].mxu0  ;;  %1172 = vmatmul.mubr.bf16.gmra.mrb[40].mxu0 %v711_v31  ;;  %v599_v24 = vpack.c.bf16 %v2710_v17, %v2704_v8  ;;  %v2714_v25 = vpop.f32.mrb[15].mxu1  ;;  %v2315_v34 = vld [vmem:[#allocation7 + $0x190] ss:$8 sps:$4 sm:$0xff]  }
 0x16e   :  { %v598_v41 = vpack.c.bf16 %v429_v39, %v425_v30  ;;  %1241 = vmatpush1.bf16.msra.mxu0 %v2300_v26  ;;  %v600_v31 = vpack.c.bf16 %v2714_v25, %v2707_v13 }
 0x16f   :  { %v683_v43 = vadd.bf16 %v2645_v27, %v597_v38  ;;  %1242 = vmatprep.subr.bf16.mxu0 %v2305_v32  ;;  %v2320_v38 = vld [vmem:[#allocation7 + $0x1a4] ss:$8 sps:$4 sm:$0xff]  }
 0x170   :  { %v684_v45 = vadd.bf16 %v2648_v29, %v598_v41 }
 0x171   :  { %v715_v52 = vmax.bf16 %v2487_v1, %v683_v43 }
 0x172   :  { %1243 = vmatpush1.bf16.msra.mxu0 %v2303_v42  ;;  %v433_v47 = vpop.f32.mrb[16].mxu0  ;;  %v716_v48 = vmax.bf16 %v2487_v1, %v684_v45  ;;  %v2720_v41 = vpop.f32.mrb[16].mxu1  ;;  %v642_v45 = vcombine.high %v2636_v21, %v2636_v21 }
 0x173   :  { %v435_v51 = vpop.f32.mrb[17].mxu0  ;;  %1244 = vmatprep.subr.bf16.mxu0 %v2308_v44  ;;  %v2318_v44 = vld [vmem:[#allocation7 + $0x1a0] ss:$8 sps:$4 sm:$0xff]  }
 0x174   :  { %v437_v55 = vpop.f32.mrb[18].mxu0  ;;  %1181 = vmatprep.mubr.bf16.mxu0 %v716_v48 }
 0x175   :  { %v601_v59 = vpack.c.bf16 %v437_v55, %v433_v47  ;;  %v439_v60 = vpop.f32.mrb[19].mxu0  ;;  %1182 = vmatmul.mubr.bf16.gmra.mrb[44].mxu0 %v715_v52  ;;  %v2725_v47 = vpop.f32.mrb[17].mxu1 }
 0x176   :  { %v602_v63 = vpack.c.bf16 %v439_v60, %v435_v51  ;;  %1245 = vmatpush1.bf16.msra.mxu0 %v2306_v49  ;;  %v2323_v51 = vld [vmem:[#allocation7 + $0x1b4] ss:$8 sps:$4 sm:$0xff]   ;;  %v2728_v52 = vpop.f32.mrb[18].mxu1 }
 0x177   :  { %v687_v2 = vadd.bf16 %v2645_v27, %v601_v59  ;;  %1246 = vmatprep.subr.bf16.mxu0 %v2311_v53  ;;  %v603_v55 = vpack.c.bf16 %v2728_v52, %v2720_v41  ;;  %v2732_v59 = vpop.f32.mrb[19].mxu1 }
 0x178   :  { %v688_v7 = vadd.bf16 %v2648_v29, %v602_v63  ;;  %v604_v21 = vpack.c.bf16 %v2732_v59, %v2725_v47 }
 0x179   :  { %v719_v15 = vmax.bf16 %v2487_v1, %v687_v2  ;;  %v2321_v2 = vld [vmem:[#allocation7 + $0x1b0] ss:$8 sps:$4 sm:$0xff]  }
 0x17a   :  { %1247 = vmatpush1.bf16.msra.mxu0 %v2309_v0  ;;  %v443_v9 = vpop.f32.mrb[20].mxu0  ;;  %v720_v11 = vmax.bf16 %v2487_v1, %v688_v7 }
 0x17b   :  { %v445_v14 = vpop.f32.mrb[21].mxu0  ;;  %1248 = vmatprep.subr.bf16.mxu0 %v2314_v4  ;;  %v665_v4 = vpack.i.b16 %v642_v45, %v642_v45 }
 0x17c   :  { %v447_v22 = vpop.f32.mrb[22].mxu0  ;;  %1191 = vmatprep.mubr.bf16.mxu0 %v720_v11 }
 0x17d   :  { %v605_v26 = vpack.c.bf16 %v447_v22, %v443_v9  ;;  %v449_v30 = vpop.f32.mrb[23].mxu0  ;;  %1192 = vmatmul.mubr.bf16.gmra.mrb[48].mxu0 %v719_v15  ;;  %v2326_v9 = vld [vmem:[#allocation7 + $0x1c4] ss:$8 sps:$4 sm:$0xff]   ;;  %v2742_v22 = vrot.slane %v665_v4, %v2640_v23 }
 0x17e   :  { %v606_v32 = vpack.c.bf16 %v449_v30, %v445_v14  ;;  %1249 = vmatpush1.bf16.msra.mxu0 %v2312_v12  ;;  %v2738_v12 = vpop.f32.mrb[20].mxu1 }
 0x17f   :  { %v691_v37 = vadd.bf16 %v2645_v27, %v605_v26  ;;  %1250 = vmatprep.subr.bf16.mxu0 %v2317_v16  ;;  %v2324_v16 = vld [vmem:[#allocation7 + $0x1c0] ss:$8 sps:$4 sm:$0xff]   ;;  %v2744_v26 = vpop.f32.mrb[21].mxu1  ;;  %v682_v57 = vadd.bf16 %v2742_v22, %v596_v61 }
 0x180   :  { %v692_v39 = vadd.bf16 %v2648_v29, %v606_v32 }
 0x181   :  { %v723_v49 = vmax.bf16 %v2487_v1, %v691_v37  ;;  %v641_v37 = vcombine.high %v2633_v20, %v2633_v20  ;;  %v674_v20 = vadd.bf16 %v2742_v22, %v588_v10 }
 0x182   :  { %1251 = vmatpush1.bf16.msra.mxu0 %v2315_v34  ;;  %v453_v42 = vpop.f32.mrb[24].mxu0  ;;  %v724_v43 = vmax.bf16 %v2487_v1, %v692_v39  ;;  %v2329_v34 = vld [vmem:[#allocation7 + $0x1d4] ss:$8 sps:$4 sm:$0xff]  }
 0x183   :  { %v455_v48 = vpop.f32.mrb[25].mxu0  ;;  %1252 = vmatprep.subr.bf16.mxu0 %v2320_v38  ;;  %v2749_v38 = vpop.f32.mrb[22].mxu1 }
 0x184   :  { %v457_v53 = vpop.f32.mrb[26].mxu0  ;;  %1201 = vmatprep.mubr.bf16.mxu0 %v724_v43  ;;  %v2753_v43 = vpop.f32.mrb[23].mxu1 }
 0x185   :  { %v609_v60 = vpack.c.bf16 %v457_v53, %v453_v42  ;;  %v459_v63 = vpop.f32.mrb[27].mxu0  ;;  %1202 = vmatmul.mubr.bf16.gmra.mrb[52].mxu0 %v723_v49  ;;  %v607_v42 = vpack.c.bf16 %v2749_v38, %v2738_v12  ;;  %v2350_v12 = vld [vmem:[#allocation8 + $0x78] sm:$0xff]  }
 0x186   :  { %v610_v0 = vpack.c.bf16 %v459_v63, %v455_v48  ;;  %1253 = vmatpush1.bf16.msra.mxu0 %v2318_v44  ;;  %v608_v48 = vpack.c.bf16 %v2753_v43, %v2744_v26  ;;  %v2332_v63 = vld [vmem:[#allocation7 + $0x1e4] ss:$8 sps:$4 sm:$0xff]   ;;  %v678_v26 = vadd.bf16 %v2742_v22, %v592_v40  ;;  %v686_v40 = vadd.bf16 %v2742_v22, %v600_v31  ;;  %v2351_v38 = vld [vmem:[#allocation8 + $0x38] sm:$0xff]  }
 0x187   :  { %v695_v7 = vadd.bf16 %v2645_v27, %v609_v60  ;;  %1254 = vmatprep.subr.bf16.mxu0 %v2323_v51  ;;  %v2327_v51 = vld [vmem:[#allocation7 + $0x1d0] ss:$8 sps:$4 sm:$0xff]   ;;  %v658_v60 = vpack.i.b16 %v641_v37, %v641_v37  ;;  %2041 = vmatprep.subr.bf16.mxu1 %v2350_v12 }
 0x188   :  { %v696_v11 = vadd.bf16 %v2648_v29, %v610_v0  ;;  %v718_v19 = vmax.bf16 %v2487_v1, %v686_v40  ;;  %2042 = vmatpush3.bf16.msra.mxu1 %v2351_v38 }
 0x189   :  { %v727_v32 = vmax.bf16 %v2487_v1, %v695_v7  ;;  %v2330_v7 = vld [vmem:[#allocation7 + $0x1e0] ss:$8 sps:$4 sm:$0xff]   ;;  %v2768_v62 = vrot.slane %v658_v60, %v2640_v23 }
 0x18a   :  { %1255 = vmatpush1.bf16.msra.mxu0 %v2321_v2  ;;  %v463_v14 = vpop.f32.mrb[28].mxu0  ;;  %v728_v15 = vmax.bf16 %v2487_v1, %v696_v11  ;;  %v2763_v2 = vpop.f32.mrb[24].mxu1 }
 0x18b   :  { %v465_v30 = vpop.f32.mrb[29].mxu0  ;;  %1256 = vmatprep.subr.bf16.mxu0 %v2326_v9  ;;  %v706_v9 = vmax.bf16 %v2487_v1, %v674_v20  ;;  %v568_v11 = vpop.f32.mrb[25].mxu1  ;;  %v677_v3 = vadd.bf16 %v2768_v62, %v591_v35  ;;  %v681_v50 = vadd.bf16 %v2768_v62, %v595_v56  ;;  %v690_v35 = vadd.bf16 %v2742_v22, %v604_v21 }
 0x18c   :  { %v467_v39 = vpop.f32.mrb[30].mxu0  ;;  %1211 = vmatprep.mubr.bf16.mxu0 %v728_v15  ;;  %v570_v10 = vpop.f32.mrb[26].mxu1  ;;  %v685_v58 = vadd.bf16 %v2768_v62, %v599_v24  ;;  %v694_v56 = vadd.bf16 %v2742_v22, %v608_v48  ;;  %v689_v61 = vadd.bf16 %v2768_v62, %v603_v55  ;;  %v693_v17 = vadd.bf16 %v2768_v62, %v607_v42  ;;  %v2352_v42 = vld [vmem:[#allocation10] sm:$0xff]  }
 0x18d   :  { %v613_v44 = vpack.c.bf16 %v467_v39, %v463_v14  ;;  %v469_v45 = vpop.f32.mrb[31].mxu0  ;;  %1212 = vmatmul.mubr.bf16.gmra.mrb[56].mxu0 %v727_v32  ;;  %v572_v14 = vpop.f32.mrb[27].mxu1  ;;  %v709_v36 = vmax.bf16 %v2487_v1, %v677_v3  ;;  %v713_v33 = vmax.bf16 %v2487_v1, %v681_v50  ;;  %v722_v46 = vmax.bf16 %v2487_v1, %v690_v35 }
 0x18e   :  { %v614_v49 = vpack.c.bf16 %v469_v45, %v465_v30  ;;  %1257 = vmatpush1.bf16.msra.mxu0 %v2324_v16  ;;  %v612_v15 = vpack.c.bf16 %v572_v14, %v568_v11  ;;  %v2333_v16 = vld [vmem:[#allocation7 + $0x1f0] ss:$8 sps:$4 sm:$0xff]   ;;  %v673_v30 = vadd.bf16 %v2768_v62, %v587_v5  ;;  %v576_v32 = vpop.f32.mrb[28].mxu1  ;;  %v714_v5 = vmax.bf16 %v2487_v1, %v682_v57  ;;  %v2353_v14 = vld [vmem:[#allocation10 + $0x8] sm:$0xff]  }
 0x18f   :  { %v699_v53 = vadd.bf16 %v2645_v27, %v613_v44  ;;  %1258 = vmatprep.subr.bf16.mxu0 %v2329_v34  ;;  %v710_v34 = vmax.bf16 %v2487_v1, %v678_v26  ;;  %v578_v37 = vpop.f32.mrb[29].mxu1  ;;  %v717_v54 = vmax.bf16 %v2487_v1, %v685_v58  ;;  %v726_v13 = vmax.bf16 %v2487_v1, %v694_v56 }
 0x190   :  { %v700_v0 = vadd.bf16 %v2648_v29, %v614_v49  ;;  %v611_v29 = vpack.c.bf16 %v570_v10, %v2763_v2  ;;  %v705_v39 = vmax.bf16 %v2487_v1, %v673_v30  ;;  %v580_v43 = vpop.f32.mrb[30].mxu1  ;;  %v721_v25 = vmax.bf16 %v2487_v1, %v689_v61  ;;  %2107 = vmatprep.subr.bf16.mxu1 %v2352_v42 }
 0x191   :  { %v731_v27 = vmax.bf16 %v2487_v1, %v699_v53  ;;  %v615_v44 = vpack.c.bf16 %v580_v43, %v576_v32  ;;  %v582_v45 = vpop.f32.mrb[31].mxu1  ;;  %v698_v8 = vadd.bf16 %v2742_v22, %v612_v15  ;;  %v725_v31 = vmax.bf16 %v2487_v1, %v693_v17 }
 0x192   :  { %1259 = vmatpush1.bf16.msra.mxu0 %v2327_v51  ;;  %v732_v4 = vmax.bf16 %v2487_v1, %v700_v0  ;;  %v616_v28 = vpack.c.bf16 %v582_v45, %v578_v37  ;;  %v697_v47 = vadd.bf16 %v2768_v62, %v611_v29 }
 0x193   :  { %1260 = vmatprep.subr.bf16.mxu0 %v2332_v63  ;;  %v730_v24 = vmax.bf16 %v2487_v1, %v698_v8  ;;  %v701_v59 = vadd.bf16 %v2768_v62, %v615_v44 }
 0x194   :  { %1221 = vmatprep.mubr.bf16.mxu0 %v732_v4  ;;  %v702_v41 = vadd.bf16 %v2742_v22, %v616_v28  ;;  %v729_v55 = vmax.bf16 %v2487_v1, %v697_v47  ;;  %v2001_v22 = vld.sshfl [vmem:[%s2965_s4] sm:$0x11 pattern:$0x75316420] }
 0x195   :  { %1222 = vmatmul.mubr.bf16.gmra.mrb[60].mxu0 %v731_v27  ;;  %v733_v21 = vmax.bf16 %v2487_v1, %v701_v59  ;;  %v1370_v48 = vcombine.high %v2001_v22, %v2001_v22  ;;  %v1377_v49 = vrot.slane %v2001_v22, %v2630_v18 }
 0x196   :  { %1261 = vmatpush1.bf16.msra.mxu0 %v2330_v7  ;;  %1264 = vmatprep.mubr.bf16.mxu0 %v706_v9  ;;  %v734_v52 = vmax.bf16 %v2487_v1, %v702_v41 }
 0x197   :  { %1262 = vmatprep.subr.bf16.mxu0 %v2335_v6  ;;  %v1384_v51 = vrot.slane %v1370_v48, %v2630_v18  ;;  %v1386_v20 = vpack.i.b16 %v1377_v49, %v1377_v49 }
 0x199   :  { %v1393_v53 = vpack.i.b16 %v1384_v51, %v1384_v51  ;;  %v2838_v0 = vrot.slane %v1386_v20, %v2640_v23 }
 0x19a   :  { %1263 = vmatpush1.bf16.msra.mxu0 %v2333_v16 }
 0x19b   :  { %v2841_v4 = vrot.slane %v1393_v53, %v2640_v23 }
 0x19d   :  { %1265 = vmatmul.mubr.bf16.vlgmr.msra.gmra.mrb[32].mxu0 %v705_v39 }
 0x19e   :  { %1274 = vmatprep.mubr.bf16.mxu0 %v710_v34  ;;  %v2354_v34 = vld [vmem:[#allocation10 + $0x10] sm:$0xff]  }
 0x1a5   :  { %1275 = vmatmul.mubr.bf16.gmra.mrb[36].mxu0 %v709_v36 }
 0x1a6   :  { %1284 = vmatprep.mubr.bf16.mxu0 %v714_v5 }
 0x1ad   :  { %1285 = vmatmul.mubr.bf16.gmra.mrb[40].mxu0 %v713_v33 }
 0x1ae   :  { %1294 = vmatprep.mubr.bf16.mxu0 %v718_v19 }
 0x1b5   :  { %1295 = vmatmul.mubr.bf16.gmra.mrb[44].mxu0 %v717_v54 }
 0x1b6   :  { %1304 = vmatprep.mubr.bf16.mxu0 %v722_v46 }
 0x1bd   :  { %1305 = vmatmul.mubr.bf16.gmra.mrb[48].mxu0 %v721_v25 }
 0x1be   :  { %1314 = vmatprep.mubr.bf16.mxu0 %v726_v13 }
 0x1c5   :  { %1315 = vmatmul.mubr.bf16.gmra.mrb[52].mxu0 %v725_v31 }
 0x1c6   :  { %1324 = vmatprep.mubr.bf16.mxu0 %v730_v24 }
 0x1cd   :  { %1325 = vmatmul.mubr.bf16.gmra.mrb[56].mxu0 %v729_v55 }
 0x1ce   :  { %1334 = vmatprep.mubr.bf16.mxu0 %v734_v52 }
 0x1d5   :  { %1335 = vmatmul.mubr.bf16.gmra.mrb[60].mxu0 %v733_v21 }
 0x270   :  { %v1266_v60 = vpop.f32.mrb[32].mxu0 }
 0x271   :  { %v1268_v63 = vpop.f32.mrb[33].mxu0 }
 0x272   :  { %v1270_v2 = vpop.f32.mrb[34].mxu0 }
 0x273   :  { %v1345_v7 = vpack.c.bf16 %v1270_v2, %v1266_v60  ;;  %v1272_v9 = vpop.f32.mrb[35].mxu0 }
 0x274   :  { %v1346_v11 = vpack.c.bf16 %v1272_v9, %v1268_v63 }
 0x275   :  { %v1399_v62 = vadd.bf16 %v2838_v0, %v1345_v7 }
 0x276   :  { %v1400_v27 = vadd.bf16 %v2841_v4, %v1346_v11 }
 0x277   :  { %v1415_v10 = vmax.bf16 %v2487_v1, %v1399_v62 }
 0x278   :  { %v1276_v6 = vpop.f32.mrb[36].mxu0  ;;  %v1416_v18 = vmax.bf16 %v2487_v1, %v1400_v27 }
 0x279   :  { %v1278_v29 = vpop.f32.mrb[37].mxu0 }
 0x27a   :  { %v1280_v15 = vpop.f32.mrb[38].mxu0  ;;  %1591 = vmatprep.mubr.bf16.mxu1 %v1416_v18 }
 0x27b   :  { %v1347_v16 = vpack.c.bf16 %v1280_v15, %v1276_v6  ;;  %v1282_v26 = vpop.f32.mrb[39].mxu0  ;;  %1592 = vmatmul.mubr.bf16.vlgmr.msra.gmra.mrb[32].mxu1 %v1415_v10 }
 0x27c   :  { %v1348_v30 = vpack.c.bf16 %v1282_v26, %v1278_v29  ;;  %2108 = vmatpush3.bf16.msra.mxu1 %v2352_v42 }
 0x27d   :  { %v1401_v32 = vadd.bf16 %v2838_v0, %v1347_v16  ;;  %2109 = vmatprep.subr.bf16.mxu1 %v2353_v14 }
 0x27e   :  { %v1402_v37 = vadd.bf16 %v2841_v4, %v1348_v30 }
 0x27f   :  { %v1417_v45 = vmax.bf16 %v2487_v1, %v1401_v32 }
 0x280   :  { %v1286_v39 = vpop.f32.mrb[40].mxu0  ;;  %v1418_v43 = vmax.bf16 %v2487_v1, %v1402_v37  ;;  %2110 = vmatpush3.bf16.msra.mxu1 %v2353_v14 }
 0x281   :  { %v1288_v44 = vpop.f32.mrb[41].mxu0  ;;  %2111 = vmatprep.subr.bf16.mxu1 %v2354_v34 }
 0x282   :  { %v1290_v28 = vpop.f32.mrb[42].mxu0  ;;  %1599 = vmatprep.mubr.bf16.mxu1 %v1418_v43 }
 0x283   :  { %v1349_v57 = vpack.c.bf16 %v1290_v28, %v1286_v39  ;;  %v1292_v3 = vpop.f32.mrb[43].mxu0  ;;  %1600 = vmatmul.mubr.bf16.gmra.mrb[36].mxu1 %v1417_v45  ;;  %v2356_v45 = vld [vmem:[#allocation10 + $0x20] sm:$0xff]   ;;  %v2357_v28 = vld [vmem:[#allocation10 + $0x28] sm:$0xff]  }
 0x284   :  { %v1350_v5 = vpack.c.bf16 %v1292_v3, %v1288_v44  ;;  %2112 = vmatpush3.bf16.msra.mxu1 %v2354_v34  ;;  %v2355_v44 = vld [vmem:[#allocation10 + $0x18] sm:$0xff]  }
 0x285   :  { %v1403_v36 = vadd.bf16 %v2838_v0, %v1349_v57  ;;  %2113 = vmatprep.subr.bf16.mxu1 %v2355_v44  ;;  %v2358_v57 = vld [vmem:[#allocation10 + $0x30] sm:$0xff]  }
 0x286   :  { %v1404_v40 = vadd.bf16 %v2841_v4, %v1350_v5 }
 0x287   :  { %v1419_v35 = vmax.bf16 %v2487_v1, %v1403_v36 }
 0x288   :  { %v1296_v50 = vpop.f32.mrb[44].mxu0  ;;  %v1420_v19 = vmax.bf16 %v2487_v1, %v1404_v40  ;;  %2114 = vmatpush3.bf16.msra.mxu1 %v2355_v44 }
 0x289   :  { %v1298_v33 = vpop.f32.mrb[45].mxu0  ;;  %2115 = vmatprep.subr.bf16.mxu1 %v2356_v45 }
 0x28a   :  { %v1300_v58 = vpop.f32.mrb[46].mxu0  ;;  %1607 = vmatprep.mubr.bf16.mxu1 %v1420_v19 }
 0x28b   :  { %v1351_v46 = vpack.c.bf16 %v1300_v58, %v1296_v50  ;;  %v1302_v54 = vpop.f32.mrb[47].mxu0  ;;  %1608 = vmatmul.mubr.bf16.gmra.mrb[40].mxu1 %v1419_v35 }
 0x28c   :  { %v1352_v56 = vpack.c.bf16 %v1302_v54, %v1298_v33  ;;  %2116 = vmatpush3.bf16.msra.mxu1 %v2356_v45 }
 0x28d   :  { %v1405_v61 = vadd.bf16 %v2838_v0, %v1351_v46  ;;  %2117 = vmatprep.subr.bf16.mxu1 %v2357_v28 }
 0x28e   :  { %v1406_v13 = vadd.bf16 %v2841_v4, %v1352_v56 }
 0x28f   :  { %v1421_v24 = vmax.bf16 %v2487_v1, %v1405_v61 }
 0x290   :  { %v1306_v25 = vpop.f32.mrb[48].mxu0  ;;  %v1422_v8 = vmax.bf16 %v2487_v1, %v1406_v13  ;;  %2118 = vmatpush3.bf16.msra.mxu1 %v2357_v28 }
 0x291   :  { %v1308_v17 = vpop.f32.mrb[49].mxu0  ;;  %2119 = vmatprep.subr.bf16.mxu1 %v2358_v57 }
 0x292   :  { %v1310_v31 = vpop.f32.mrb[50].mxu0  ;;  %1615 = vmatprep.mubr.bf16.mxu1 %v1422_v8 }
 0x293   :  { %v1353_v41 = vpack.c.bf16 %v1310_v31, %v1306_v25  ;;  %v1312_v47 = vpop.f32.mrb[51].mxu0  ;;  %1616 = vmatmul.mubr.bf16.gmra.mrb[44].mxu1 %v1421_v24 }
 0x294   :  { %v1354_v52 = vpack.c.bf16 %v1312_v47, %v1308_v17  ;;  %2120 = vmatpush3.bf16.msra.mxu1 %v2358_v57 }
 0x295   :  { %v1407_v55 = vadd.bf16 %v2838_v0, %v1353_v41 }
 0x296   :  { %v1408_v59 = vadd.bf16 %v2841_v4, %v1354_v52 }
 0x297   :  { %v1423_v42 = vmax.bf16 %v2487_v1, %v1407_v55 }
 0x298   :  { %v1316_v21 = vpop.f32.mrb[52].mxu0  ;;  %v1424_v12 = vmax.bf16 %v2487_v1, %v1408_v59 }
 0x299   :  { %v1318_v38 = vpop.f32.mrb[53].mxu0 }
 0x29a   :  { %v1320_v22 = vpop.f32.mrb[54].mxu0  ;;  %1623 = vmatprep.mubr.bf16.mxu1 %v1424_v12 }
 0x29b   :  { %v1355_v48 = vpack.c.bf16 %v1320_v22, %v1316_v21  ;;  %v1322_v49 = vpop.f32.mrb[55].mxu0  ;;  %1624 = vmatmul.mubr.bf16.gmra.mrb[48].mxu1 %v1423_v42 }
 0x29c   :  { %v1356_v51 = vpack.c.bf16 %v1322_v49, %v1318_v38 }
 0x29d   :  { %v1409_v20 = vadd.bf16 %v2838_v0, %v1355_v48 }
 0x29e   :  { %v1410_v53 = vadd.bf16 %v2841_v4, %v1356_v51 }
 0x29f   :  { %v1425_v7 = vmax.bf16 %v2487_v1, %v1409_v20 }
 0x2a0   :  { %v1326_v60 = vpop.f32.mrb[56].mxu0  ;;  %v1426_v63 = vmax.bf16 %v2487_v1, %v1410_v53 }
 0x2a1   :  { %v1328_v2 = vpop.f32.mrb[57].mxu0 }
 0x2a2   :  { %v1330_v9 = vpop.f32.mrb[58].mxu0  ;;  %1631 = vmatprep.mubr.bf16.mxu1 %v1426_v63 }
 0x2a3   :  { %v1357_v11 = vpack.c.bf16 %v1330_v9, %v1326_v60  ;;  %v1332_v62 = vpop.f32.mrb[59].mxu0  ;;  %1632 = vmatmul.mubr.bf16.gmra.mrb[52].mxu1 %v1425_v7 }
 0x2a4   :  { %v1358_v27 = vpack.c.bf16 %v1332_v62, %v1328_v2 }
 0x2a5   :  { %v1411_v6 = vadd.bf16 %v2838_v0, %v1357_v11 }
 0x2a6   :  { %v1412_v18 = vadd.bf16 %v2841_v4, %v1358_v27 }
 0x2a7   :  { %v1427_v15 = vmax.bf16 %v2487_v1, %v1411_v6 }
 0x2a8   :  { %v1336_v10 = vpop.f32.mrb[60].mxu0  ;;  %v1428_v29 = vmax.bf16 %v2487_v1, %v1412_v18 }
 0x2a9   :  { %v1338_v14 = vpop.f32.mrb[61].mxu0 }
 0x2aa   :  { %v1340_v16 = vpop.f32.mrb[62].mxu0  ;;  %1639 = vmatprep.mubr.bf16.mxu1 %v1428_v29 }
 0x2ab   :  { %v1359_v26 = vpack.c.bf16 %v1340_v16, %v1336_v10  ;;  %v1342_v30 = vpop.f32.mrb[63].mxu0  ;;  %1640 = vmatmul.mubr.bf16.gmra.mrb[56].mxu1 %v1427_v15 }
 0x2ac   :  { %v1360_v32 = vpack.c.bf16 %v1342_v30, %v1338_v14 }
 0x2ad   :  { %v1413_v34 = vadd.bf16 %v2838_v0, %v1359_v26  ;;  %v2359_v0 = vld [vmem:[#allocation10 + $0x38] sm:$0xff]  }
 0x2ae   :  { %v1414_v37 = vadd.bf16 %v2841_v4, %v1360_v32  ;;  %2121 = vmatprep.subr.bf16.mxu1 %v2359_v0  ;;  %v1664_v4 = vld [vmem:[%s2967_s6] sm:$0x1] }
 0x2af   :  { %v1429_v43 = vmax.bf16 %v2487_v1, %v1413_v34  ;;  %2122 = vmatpush3.bf16.msra.mxu1 %v2359_v0  ;;  %v1666_v5 = vpack.i.b16 %v1664_v4, %v1664_v4 }
 0x2b0   :  { %v1430_v39 = vmax.bf16 %v2487_v1, %v1414_v37 }
 0x2b1   :  { %v2879_v35 = vrot.slane %v1666_v5, %v2640_v23 }
 0x2b2   :  { %1647 = vmatprep.mubr.bf16.mxu1 %v1430_v39 }
 0x2b3   :  { %1648 = vmatmul.mubr.bf16.gmra.mrb[60].mxu1 %v1429_v43 }
 0x34e   :  { %v2043_v3 = vpop.f32.mrb[32].mxu1 }
 0x34f   :  { %v2044_v36 = vpop.f32.mrb[33].mxu1 }
 0x350   :  { %v2045_v40 = vadd.f32 %v2044_v36, %v2043_v3  ;;  %v2046_v50 = vpop.f32.mrb[34].mxu1 }
 0x351   :  { %v2047_v19 = vpop.f32.mrb[35].mxu1 }
 0x352   :  { %v2048_v33 = vadd.f32 %v2047_v19, %v2046_v50 }
 0x354   :  { %v1656_v58 = vpack.c.bf16 %v2048_v33, %v2045_v40 }
 0x356   :  { %v1672_v46 = vadd.bf16 %v2879_v35, %v1656_v58  ;;  %v2049_v54 = vpop.f32.mrb[36].mxu1 }
 0x357   :  { %v2050_v56 = vpop.f32.mrb[37].mxu1 }
 0x358   :  { %v2051_v61 = vadd.f32 %v2050_v56, %v2049_v54  ;;  %v2052_v13 = vpop.f32.mrb[38].mxu1  ;;  %v1680_v25 = vmax.bf16 %v2487_v1, %v1672_v46 }
 0x359   :  { %v2053_v8 = vpop.f32.mrb[39].mxu1 }
 0x35a   :  { %v2054_v17 = vadd.f32 %v2053_v8, %v2052_v13  ;;  %2123 = vmatprep.mubr.bf16.mxu1 %v1680_v25 }
 0x35c   :  { %v1657_v24 = vpack.c.bf16 %v2054_v17, %v2051_v61  ;;  %v2026_v61 = vld [vmem:[#allocation2] ss:$0 sm:$0xff] }
 0x35e   :  { %v1673_v31 = vadd.bf16 %v2879_v35, %v1657_v24  ;;  %v2055_v41 = vpop.f32.mrb[40].mxu1 }
 0x35f   :  { %v2056_v47 = vpop.f32.mrb[41].mxu1 }
 0x360   :  { %v1681_v23 = vmax.bf16 %v2487_v1, %v1673_v31  ;;  %v2057_v52 = vadd.f32 %v2056_v47, %v2055_v41  ;;  %v2058_v55 = vpop.f32.mrb[42].mxu1 }
 0x361   :  { %v2059_v59 = vpop.f32.mrb[43].mxu1 }
 0x362   :  { %v2060_v21 = vadd.f32 %v2059_v59, %v2058_v55  ;;  %2124 = vmatmul.mubr.bf16.vlgmr.msra.gmra.mrb[64].mxu1 %v1681_v23 }
 0x364   :  { %v1658_v12 = vpack.c.bf16 %v2060_v21, %v2057_v52 }
 0x366   :  { %v1674_v38 = vadd.bf16 %v2879_v35, %v1658_v12  ;;  %v2061_v42 = vpop.f32.mrb[44].mxu1 }
 0x367   :  { %v2062_v22 = vpop.f32.mrb[45].mxu1 }
 0x368   :  { %v2063_v48 = vadd.f32 %v2062_v22, %v2061_v42  ;;  %v2064_v49 = vpop.f32.mrb[46].mxu1  ;;  %v1682_v51 = vmax.bf16 %v2487_v1, %v1674_v38 }
 0x369   :  { %v2065_v20 = vpop.f32.mrb[47].mxu1 }
 0x36a   :  { %v2066_v53 = vadd.f32 %v2065_v20, %v2064_v49  ;;  %2127 = vmatprep.mubr.bf16.mxu1 %v1682_v51 }
 0x36c   :  { %v1659_v60 = vpack.c.bf16 %v2066_v53, %v2063_v48 }
 0x36e   :  { %v1675_v63 = vadd.bf16 %v2879_v35, %v1659_v60  ;;  %v2067_v2 = vpop.f32.mrb[48].mxu1 }
 0x36f   :  { %v2068_v7 = vpop.f32.mrb[49].mxu1 }
 0x370   :  { %v2069_v9 = vadd.f32 %v2068_v7, %v2067_v2  ;;  %v2070_v11 = vpop.f32.mrb[50].mxu1  ;;  %v1683_v62 = vmax.bf16 %v2487_v1, %v1675_v63 }
 0x371   :  { %v2071_v27 = vpop.f32.mrb[51].mxu1 }
 0x372   :  { %v2072_v6 = vadd.f32 %v2071_v27, %v2070_v11  ;;  %2128 = vmatmul.mubr.bf16.gmra.mrb[68].mxu1 %v1683_v62 }
 0x374   :  { %v1660_v18 = vpack.c.bf16 %v2072_v6, %v2069_v9 }
 0x376   :  { %v1676_v10 = vadd.bf16 %v2879_v35, %v1660_v18  ;;  %v2073_v29 = vpop.f32.mrb[52].mxu1 }
 0x377   :  { %v2074_v14 = vpop.f32.mrb[53].mxu1 }
 0x378   :  { %v2075_v15 = vadd.f32 %v2074_v14, %v2073_v29  ;;  %v2076_v16 = vpop.f32.mrb[54].mxu1  ;;  %v1684_v26 = vmax.bf16 %v2487_v1, %v1676_v10 }
 0x379   :  { %v2077_v30 = vpop.f32.mrb[55].mxu1 }
 0x37a   :  { %v2078_v32 = vadd.f32 %v2077_v30, %v2076_v16  ;;  %2131 = vmatprep.mubr.bf16.mxu1 %v1684_v26 }
 0x37c   :  { %v1661_v34 = vpack.c.bf16 %v2078_v32, %v2075_v15 }
 0x37e   :  { %v1677_v37 = vadd.bf16 %v2879_v35, %v1661_v34  ;;  %v2079_v39 = vpop.f32.mrb[56].mxu1 }
 0x37f   :  { %v2080_v43 = vpop.f32.mrb[57].mxu1 }
 0x380   :  { %v2081_v44 = vadd.f32 %v2080_v43, %v2079_v39  ;;  %v2082_v45 = vpop.f32.mrb[58].mxu1  ;;  %v1685_v28 = vmax.bf16 %v2487_v1, %v1677_v37 }
 0x381   :  { %v2083_v57 = vpop.f32.mrb[59].mxu1 }
 0x382   :  { %v2084_v0 = vadd.f32 %v2083_v57, %v2082_v45  ;;  %2132 = vmatmul.mubr.bf16.gmra.mrb[72].mxu1 %v1685_v28 }
 0x384   :  { %v1662_v4 = vpack.c.bf16 %v2084_v0, %v2081_v44 }
 0x386   :  { %v1678_v3 = vadd.bf16 %v2879_v35, %v1662_v4  ;;  %v2085_v5 = vpop.f32.mrb[60].mxu1 }
 0x387   :  { %v2086_v36 = vpop.f32.mrb[61].mxu1 }
 0x388   :  { %v2087_v40 = vadd.f32 %v2086_v36, %v2085_v5  ;;  %v2088_v50 = vpop.f32.mrb[62].mxu1  ;;  %v1686_v19 = vmax.bf16 %v2487_v1, %v1678_v3 }
 0x389   :  { %v2089_v33 = vpop.f32.mrb[63].mxu1 }
 0x38a   :  { %v2090_v58 = vadd.f32 %v2089_v33, %v2088_v50  ;;  %2135 = vmatprep.mubr.bf16.mxu1 %v1686_v19 }
 0x38c   :  { %v1663_v46 = vpack.c.bf16 %v2090_v58, %v2087_v40 }
 0x38e   :  { %v1679_v54 = vadd.bf16 %v2879_v35, %v1663_v46 }
 0x390   :  { %v1687_v56 = vmax.bf16 %v2487_v1, %v1679_v54 }
 0x392   :  { %2136 = vmatmul.mubr.bf16.gmra.mrb[76].mxu1 %v1687_v56 }
 0x435   :  { %v2125_v13 = vpop.f32.mrb[64].mxu1 }
 0x436   :  { %v1858_v25 = vadd.f32 %v2125_v13, %v2026_v61  ;;  %v1786_v8 = vpop.f32.mrb[65].mxu1 }
 0x437   :  { %v1856_v17 = vadd.f32 %v2026_v61, %v1786_v8  ;;  %v2126_v24 = vpop.f32.mrb[66].mxu1 }
 0x438   :  { %1875 = vst.msk [vmem:[%s2970_s9 + $0x10] sm:$0xff] %vm1872_vm0, %v1858_v25  ;;  %v1859_v31 = vadd.f32 %v2126_v24, %v2026_v61  ;;  %v1789_v41 = vpop.f32.mrb[67].mxu1 }
 0x439   :  { %1873 = vst.msk [vmem:[%s2970_s9] sm:$0xff] %vm1872_vm0, %v1856_v17  ;;  %v1857_v1 = vadd.f32 %v2026_v61, %v1789_v41 }
 0x43a   :  { %1876 = vst.msk [vmem:[%s2970_s9 + $0x18] sm:$0xff] %vm1872_vm0, %v1859_v31 }
 0x43b   :  { %1874 = vst.msk [vmem:[%s2970_s9 + $0x8] sm:$0xff] %vm1872_vm0, %v1857_v1 }
 0x445   :  { %v2129_v35 = vpop.f32.mrb[68].mxu1 }
 0x446   :  { %v1862_v47 = vadd.f32 %v2129_v35, %v2026_v61  ;;  %v1802_v23 = vpop.f32.mrb[69].mxu1 }
 0x447   :  { %v1860_v52 = vadd.f32 %v2026_v61, %v1802_v23  ;;  %v2130_v55 = vpop.f32.mrb[70].mxu1 }
 0x448   :  { %1879 = vst.msk [vmem:[%s2970_s9 + $0x30] sm:$0xff] %vm1872_vm0, %v1862_v47  ;;  %v1863_v59 = vadd.f32 %v2130_v55, %v2026_v61  ;;  %v1805_v21 = vpop.f32.mrb[71].mxu1 }
 0x449   :  { %1877 = vst.msk [vmem:[%s2970_s9 + $0x20] sm:$0xff] %vm1872_vm0, %v1860_v52  ;;  %v1861_v12 = vadd.f32 %v2026_v61, %v1805_v21 }
 0x44a   :  { %1880 = vst.msk [vmem:[%s2970_s9 + $0x38] sm:$0xff] %vm1872_vm0, %v1863_v59 }
 0x44b   :  { %1878 = vst.msk [vmem:[%s2970_s9 + $0x28] sm:$0xff] %vm1872_vm0, %v1861_v12 }
 0x455   :  { %v2133_v38 = vpop.f32.mrb[72].mxu1 }
 0x456   :  { %v1866_v42 = vadd.f32 %v2133_v38, %v2026_v61  ;;  %v1818_v22 = vpop.f32.mrb[73].mxu1 }
 0x457   :  { %v1864_v48 = vadd.f32 %v2026_v61, %v1818_v22  ;;  %v2134_v49 = vpop.f32.mrb[74].mxu1 }
 0x458   :  { %1883 = vst.msk [vmem:[%s2970_s9 + $0x50] sm:$0xff] %vm1872_vm0, %v1866_v42  ;;  %v1867_v51 = vadd.f32 %v2134_v49, %v2026_v61  ;;  %v1821_v20 = vpop.f32.mrb[75].mxu1 }
 0x459   :  { %1881 = vst.msk [vmem:[%s2970_s9 + $0x40] sm:$0xff] %vm1872_vm0, %v1864_v48  ;;  %v1865_v53 = vadd.f32 %v2026_v61, %v1821_v20 }
 0x45a   :  { %1884 = vst.msk [vmem:[%s2970_s9 + $0x58] sm:$0xff] %vm1872_vm0, %v1867_v51 }
 0x45b   :  { %1882 = vst.msk [vmem:[%s2970_s9 + $0x48] sm:$0xff] %vm1872_vm0, %v1865_v53 }
 0x465   :  { %v2137_v60 = vpop.f32.mrb[76].mxu1 }
 0x466   :  { %v1870_v63 = vadd.f32 %v2137_v60, %v2026_v61  ;;  %v1834_v2 = vpop.f32.mrb[77].mxu1 }
 0x467   :  { %v1868_v7 = vadd.f32 %v2026_v61, %v1834_v2  ;;  %v2138_v9 = vpop.f32.mrb[78].mxu1 }
 0x468   :  { %1887 = vst.msk [vmem:[%s2970_s9 + $0x70] sm:$0xff] %vm1872_vm0, %v1870_v63  ;;  %v1871_v11 = vadd.f32 %v2138_v9, %v2026_v61  ;;  %v1837_v62 = vpop.f32.mrb[79].mxu1 }
 0x469   :  { %1885 = vst.msk [vmem:[%s2970_s9 + $0x60] sm:$0xff] %vm1872_vm0, %v1868_v7  ;;  %v1869_v27 = vadd.f32 %v2026_v61, %v1837_v62 }
 0x46a   :  { %1888 = vst.msk [vmem:[%s2970_s9 + $0x78] sm:$0xff] %vm1872_vm0, %v1871_v11 }
 0x46b   :  { %1886 = vst.msk [vmem:[%s2970_s9 + $0x68] sm:$0xff] %vm1872_vm0, %v1869_v27 }
 0x46c   :  { %1893 = vsyncpa [#allocation4], 1 }
 0x46d   :  { %1894 = vsyncpa [#allocation6], 1 }
 0x46e   :  { %1895 = vsyncpa [#allocation9], 1 }

</bundles_post_ra>
